<compile_context>
chip_gen: v5e
topology: v5e:2x2
jax: 0.10.0
libtpu: 0.0.40
codegen_flags: <defaults>
</compile_context>

<pallas_src>
import functools

import jax
import jax.numpy as jnp
from jax import lax
from jax.experimental import pallas as pl
from jax.experimental.pallas import tpu as pltpu


_COMPUTE_DTYPE = jnp.bfloat16        # bf16 operands on the MXU, fp32 accumulate
_VMEM_LIMIT = 32 * 1024 * 1024       # <= physical on v5e/v6e/v7x
_VMEM_BUDGET = 26 * 1024 * 1024      # target for the tile chooser (headroom)


def _round_up(x, m):
    return (x + m - 1) // m * m


# Tap -> parity-plane bookkeeping.
#   tap t = kh*3 + kw ; parity plane p = (kh % 2)*2 + (kw % 2)
#   flat row offset inside that plane = (kh // 2) * Wq + (kw // 2)
# Grouped per plane, biggest-compute plane first so the (rare) cold-start DMAs
# of later planes hide under the 4 matmuls of plane 0.
_TAPS_BY_PLANE = (
    ((0, 0, 0), (2, 0, 1), (6, 1, 0), (8, 1, 1)),   # (even row, even col): 4 taps
    ((1, 0, 0), (7, 1, 0)),                          # (even row, odd  col): 2 taps
    ((3, 0, 0), (5, 0, 1)),                          # (odd  row, even col): 2 taps
    ((4, 0, 0),),                                    # (odd  row, odd  col): 1 tap
)


# ----------------------------------------------------------------------------
# Pallas kernel: stride-2 3x3 conv, one row tile per grid step.
#   grid = (n_outer, n_inner)   o: megacore chunk     ("parallel")
#                               j: row tile in chunk  ("arbitrary")
#   p0..p3 : (MA, Cin)      parity planes, stay in HBM (pl.ANY)
#   w_ref  : (9, Cin, Coutp) all 9 tap slabs, resident in VMEM
#   b_ref  : (1, Coutp)      bias (fp32)
#   o_ref  : (tm, Coutp)     output tile
# ----------------------------------------------------------------------------
def _conv3x3_s2_kernel(p0, p1, p2, p3, w_ref, b_ref, o_ref,
                       acc_ref, abuf, sem, *, wq, tm, win, n_inner):
    o = pl.program_id(0)
    j = pl.program_id(1)
    planes = (p0, p1, p2, p3)
    tile = o * n_inner + j
    slot = j % 2

    def plane_copy(t, sl, p):
        row0 = pl.multiple_of(t * tm, 8)
        return pltpu.make_async_copy(
            planes[p].at[pl.ds(row0, win), :], abuf.at[sl, p], sem.at[sl, p])

    def start_fetch(t, sl):
        for p in range(4):
            plane_copy(t, sl, p).start()

    # Cold start: the first tile of this core's chunk was never prefetched.
    @pl.when(j == 0)
    def _():
        start_fetch(tile, slot)

    # Cross-tile prefetch of the NEXT row tile, issued before any wait so the
    # DMA engine gets a full tile of lead time and the scalar address math is
    # not stuck behind a .wait().
    @pl.when(j + 1 < n_inner)
    def _():
        start_fetch(tile + 1, 1 - slot)

    # 9-tap reduction, fully unrolled.  Waits are per plane; descriptors match
    # exactly the copies that were started for this (tile, slot).
    first = True
    for p in range(4):
        plane_copy(tile, slot, p).wait()
        buf = abuf.at[slot, p]                         # (win, Cin) VMEM view
        for t, qh, qw in _TAPS_BY_PLANE[p]:
            off = qh * wq + qw                         # static tap row offset
            contrib = jnp.dot(buf[pl.ds(off, tm), :], w_ref[t],
                              preferred_element_type=jnp.float32)
            if first:
                acc_ref[...] = contrib                 # no zero-fill
                first = False
            else:
                acc_ref[...] += contrib

    o_ref[...] = (acc_ref[...] + b_ref[...]).astype(o_ref.dtype)


# ----------------------------------------------------------------------------
# Glue: parity decomposition (replaces im2col; ~1.1x the input, no 9x blow-up).
# ----------------------------------------------------------------------------
def _parity_planes(x_nhwc, hq, wq, ma):
    """Split the zero-padded NHWC input into its 4 (row,col)-parity planes,
    each cropped/zero-padded to (N, hq, wq, C) and flattened over (N, hq, wq),
    so every 3x3/stride-2 tap is a contiguous row window of one plane.
    Returned as 4 separate arrays (no jnp.stack copy)."""
    N, _, _, C = x_nhwc.shape
    xp = jnp.pad(x_nhwc, ((0, 0), (1, 1), (1, 1), (0, 0)))
    planes = []
    for ph in (0, 1):
        for pw in (0, 1):
            sub = xp[:, ph::2, pw::2, :][:, :hq, :wq, :]
            sub = jnp.pad(sub, ((0, 0), (0, hq - sub.shape[1]),
                                (0, wq - sub.shape[2]), (0, 0)))
            sub = sub.reshape(N * hq * wq, C)
            planes.append(jnp.pad(sub, ((0, ma - sub.shape[0]), (0, 0))))
    # TODO(synk): do the stride-2 parity slicing inside the kernel via strided
    # DMA (pl.ds(..., stride=2)) to drop this XLA glue pass over the input.
    return planes


@jax.jit
def _conv3x3_s2_p1(x_nhwc, w_oihw, b):
    """y = conv2d(x, w, stride=2, padding=1) + b   (NHWC in / NHWC out).
    bf16 activations & weights on the MXU, fp32 accumulation, output in the
    input dtype."""
    N, H, W, C = x_nhwc.shape
    Cout = w_oihw.shape[0]
    out_dtype = x_nhwc.dtype
    cdt = _COMPUTE_DTYPE

    Ho = (H - 1) // 2 + 1
    Wo = (W - 1) // 2 + 1
    # +1 so every tap of a *valid* output row (ho < Ho, wo < Wo) stays inside
    # the same image's plane; the junk rows at ho == Ho / wo == Wo are cropped
    # at the end, so their (possibly wrapping) taps never reach the output.
    Hq, Wq = Ho + 1, Wo + 1
    M = N * Hq * Wq                      # flattened output rows incl. junk rows
    coutp = _round_up(Cout, 128)         # lane-dense output stores
    out_isz = jnp.dtype(out_dtype).itemsize

    # ---- row-tile selection: VMEM-budget aware, >=2 tiles for v7x megacore.
    w_bytes = 2 * 9 * C * coutp * 2              # resident weights (x2 buffers)
    row_bytes = 2 * 4 * C * 2 + coutp * 4 + 2 * coutp * out_isz
    slack = 2 * 4 * (Wq + 8) * C * 2             # plane-cache window overhang
    tm_cap = max(8, (_VMEM_BUDGET - w_bytes - slack) // row_bytes // 8 * 8)
    tm = max(8, min(512, _round_up(pl.cdiv(M, 2), 8), tm_cap))

    m_tiles = pl.cdiv(M, tm)
    if m_tiles > 1 and m_tiles % 2:
        m_tiles += 1                     # equal megacore chunks (pads one tile)
    n_outer, n_inner = (2, m_tiles // 2) if m_tiles > 1 else (1, 1)
    m_out = m_tiles * tm

    win = _round_up(tm + Wq + 1, 8)      # plane rows covering all 9 taps of a tile
    ma = m_out - tm + win                # plane length incl. last tile's window

    planes = _parity_planes(x_nhwc.astype(cdt), Hq, Wq, ma)
    # (Cout, Cin, 3, 3) -> (9, Cin, Coutp): one (Cin, Coutp) slab per tap.
    w9 = jnp.transpose(w_oihw, (2, 3, 1, 0)).reshape(9, C, Cout)
    w9 = jnp.pad(w9, ((0, 0), (0, 0), (0, coutp - Cout))).astype(cdt)
    b2 = jnp.pad(b.astype(jnp.float32), (0, coutp - Cout)).reshape(1, coutp)

    cost = pl.CostEstimate(
        flops=2 * m_out * 9 * C * coutp,
        transcendentals=0,
        bytes_accessed=(m_tiles * 4 * win * C + 9 * C * coutp) * 2
                       + m_out * coutp * out_isz,
    )

    kernel = functools.partial(_conv3x3_s2_kernel,
                               wq=Wq, tm=tm, win=win, n_inner=n_inner)

    out = pl.pallas_call(
        kernel,
        out_shape=jax.ShapeDtypeStruct((m_out, coutp), out_dtype),
        grid_spec=pltpu.PrefetchScalarGridSpec(
            num_scalar_prefetch=0,
            grid=(n_outer, n_inner),
            in_specs=[
                pl.BlockSpec(memory_space=pl.ANY),       # 4 parity planes (HBM)
                pl.BlockSpec(memory_space=pl.ANY),
                pl.BlockSpec(memory_space=pl.ANY),
                pl.BlockSpec(memory_space=pl.ANY),
                # Weights + bias: constant block index -> fetched once, stay
                # resident in VMEM for the whole grid.
                pl.BlockSpec((9, C, coutp), lambda o, j: (0, 0, 0)),
                pl.BlockSpec((1, coutp), lambda o, j: (0, 0)),
            ],
            out_specs=pl.BlockSpec((tm, coutp),
                                   lambda o, j: (o * n_inner + j, 0)),
            scratch_shapes=[
                pltpu.VMEM((tm, coutp), jnp.float32),    # fp32 accumulator
                pltpu.VMEM((2, 4, win, C), cdt),         # dbl-buffered plane cache
                pltpu.SemaphoreType.DMA((2, 4)),
            ],
        ),
        compiler_params=pltpu.CompilerParams(
            dimension_semantics=("parallel", "arbitrary"),
            vmem_limit_bytes=_VMEM_LIMIT),
        cost_estimate=cost,
    )(planes[0], planes[1], planes[2], planes[3], w9, b2)

    # Strip row / edge / lane padding; stay NHWC.
    return out[:M].reshape(N, Hq, Wq, coutp)[:, :Ho, :Wo, :Cout]


# ----------------------------------------------------------------------------
# Module: LastLevelP6P7
# ----------------------------------------------------------------------------
def init_last_level_p6p7(key, in_channels, out_channels):
    """kaiming_uniform_(a=1) weights, zero bias (matches the PyTorch init)."""
    k6, k7 = jax.random.split(key)

    def kaiming_uniform(k, cout, cin):
        fan_in = cin * 3 * 3
        gain = (2.0 / (1.0 + 1.0 ** 2)) ** 0.5       # a = 1  ->  gain = 1
        bound = gain * (3.0 / fan_in) ** 0.5
        return jax.random.uniform(k, (cout, cin, 3, 3), jnp.float32, -bound, bound)

    return {
        "p6_w": kaiming_uniform(k6, out_channels, in_channels),
        "p6_b": jnp.zeros((out_channels,), jnp.float32),
        "p7_w": kaiming_uniform(k7, out_channels, out_channels),
        "p7_b": jnp.zeros((out_channels,), jnp.float32),
        "use_P5": in_channels == out_channels,       # plain python bool
    }


def last_level_p6p7_forward(params, c5, p5):
    x = p5 if params["use_P5"] else c5
    x = jnp.transpose(x, (0, 2, 3, 1))                       # NCHW -> NHWC once
    p6 = _conv3x3_s2_p1(x, params["p6_w"], params["p6_b"])
    # TODO(synk): fuse p6 -> relu -> p7 into a single pallas_call keeping
    # relu(p6) resident in VMEM (P6/P7 are small; the extra launch + HBM
    # round-trip are a noticeable fraction of total time).
    p7 = _conv3x3_s2_p1(jax.nn.relu(p6), params["p7_w"], params["p7_b"])
    return [jnp.transpose(p6, (0, 3, 1, 2)),                 # NHWC -> NCHW once
            jnp.transpose(p7, (0, 3, 1, 2))]


# ----------------------------------------------------------------------------
# Reference (pure-JAX) mirroring the kernel's numerics (bf16 operands, fp32 acc)
# ----------------------------------------------------------------------------
def _ref_conv(x, w, b):
    y = lax.conv_general_dilated(
        x.astype(_COMPUTE_DTYPE), w.astype(_COMPUTE_DTYPE),
        window_strides=(2, 2), padding=((1, 1), (1, 1)),
        dimension_numbers=("NCHW", "OIHW", "NCHW"),
        preferred_element_type=jnp.float32)
    return y + b.reshape(1, -1, 1, 1)


def _ref_forward(params, c5, p5):
    x = p5 if params["use_P5"] else c5
    p6 = _ref_conv(x, params["p6_w"], params["p6_b"])
    p7 = _ref_conv(jnp.maximum(p6, 0.0), params["p7_w"], params["p7_b"])
    return [p6, p7]


if __name__ == "__main__":
    in_channels, out_channels = 4, 8          # in != out  ->  forward uses c5
    N, H, W = 2, 16, 16

    key = jax.random.PRNGKey(0)
    kp, kc, kq = jax.random.split(key, 3)
    params = init_last_level_p6p7(kp, in_channels, out_channels)

    c5 = jax.random.normal(kc, (N, in_channels, H, W), jnp.float32)
    p5 = jax.random.normal(kq, (N, out_channels, H, W), jnp.float32)

    p6, p7 = last_level_p6p7_forward(params, c5, p5)
    jax.block_until_ready(p6)
    jax.block_until_ready(p7)

    r6, r7 = _ref_forward(params, c5, p5)
    assert p6.shape == (N, out_channels, H // 2, W // 2), p6.shape
    assert p7.shape == (N, out_channels, H // 4, W // 4), p7.shape
    # Both sides use bf16 operands with fp32 accumulation -> tight tolerance.
    assert jnp.allclose(p6, r6, atol=2e-2, rtol=2e-2), float(jnp.abs(p6 - r6).max())
    assert jnp.allclose(p7, r7, atol=2e-2, rtol=2e-2), float(jnp.abs(p7 - r7).max())

    print("KERNEL_OK")
</pallas_src>

<mosaic_0001>
module attributes {stable_mosaic.version = 11 : i64} {
  func.func @_conv3x3_s2_kernel(%arg0: i32, %arg1: i32, %arg2: memref<192x4xbf16, #tpu.memory_space<any>>, %arg3: memref<192x4xbf16, #tpu.memory_space<any>>, %arg4: memref<192x4xbf16, #tpu.memory_space<any>>, %arg5: memref<192x4xbf16, #tpu.memory_space<any>>, %arg6: memref<9x4x128xbf16, #tpu.memory_space<vmem>>, %arg7: memref<1x128xf32, #tpu.memory_space<vmem>>, %arg8: memref<88x128xf32, #tpu.memory_space<vmem>>, %arg9: memref<88x128xf32, #tpu.memory_space<vmem>>, %arg10: memref<2x4x104x4xbf16, #tpu.memory_space<vmem>>, %arg11: memref<2x4x!tpu.dma_semaphore, #tpu.memory_space<semaphore_mem>>) attributes {dimension_semantics = [#tpu.dimension_semantics<parallel>, #tpu.dimension_semantics<arbitrary>], iteration_bounds = array<i64: 2, 1>, scalar_prefetch = 0 : i64, scratch_operands = 3 : i64, tpu.core_type = #tpu.core_type<tc>, window_params = [{}, {}, {}, {}, {pipeline_mode = #tpu.pipeline_mode<synchronous>, transform_indices = @transform_4, window_bounds = array<i64: 9, 4, 128>}, {pipeline_mode = #tpu.pipeline_mode<synchronous>, transform_indices = @transform_5, window_bounds = array<i64: 1, 128>}, {transform_indices = @transform_6, window_bounds = array<i64: 88, 128>}]} {
    %c1_i32 = arith.constant 1 : i32
    %0 = arith.muli %arg0, %c1_i32 : i32
    %1 = arith.addi %0, %arg1 : i32
    %c2_i32 = arith.constant 2 : i32
    %c0_i32 = arith.constant 0 : i32
    %2 = arith.cmpi eq, %c2_i32, %c0_i32 : i32
    %c1_i32_0 = arith.constant 1 : i32
    %3 = arith.select %2, %c1_i32_0, %c2_i32 : i32
    %4 = arith.remsi %arg1, %3 : i32
    %c0_i32_1 = arith.constant 0 : i32
    %5 = arith.cmpi ne, %4, %c0_i32_1 : i32
    %c0_i32_2 = arith.constant 0 : i32
    %6 = arith.cmpi slt, %4, %c0_i32_2 : i32
    %c0_i32_3 = arith.constant 0 : i32
    %7 = arith.cmpi slt, %3, %c0_i32_3 : i32
    %8 = arith.xori %6, %7 : i1
    %9 = arith.andi %8, %5 : i1
    %10 = arith.addi %4, %3 : i32
    %11 = arith.select %9, %10, %4 : i32
    %c0_i32_4 = arith.constant 0 : i32
    %12 = arith.cmpi eq, %arg1, %c0_i32_4 : i32
    %13 = arith.extui %12 : i1 to i32
    %c0_i32_5 = arith.constant 0 : i32
    %14 = arith.cmpi ne, %13, %c0_i32_5 : i32
    scf.if %14 {
      %c88_i32_140 = arith.constant 88 : i32
      %131 = arith.muli %1, %c88_i32_140 : i32
      %132 = tpu.assume_multiple %131, 8 : i32
      %c0_i32_141 = arith.constant 0 : i32
      %c0_i32_142 = arith.constant 0 : i32
      %c0_i32_143 = arith.constant 0 : i32
      %133 = tpu.memref_slice %arg2[%132, %c0_i32_143] : memref<192x4xbf16, #tpu.memory_space<any>> -> memref<104x4xbf16, #tpu.memory_space<any>>
      %c0_i32_144 = arith.constant 0 : i32
      %c0_i32_145 = arith.constant 0 : i32
      %134 = tpu.memref_slice %arg10[%11, %c0_i32_141, %c0_i32_144, %c0_i32_145] : memref<2x4x104x4xbf16, #tpu.memory_space<vmem>> -> memref<1x1x104x4xbf16, #tpu.memory_space<vmem>>
      %135 = tpu.memref_squeeze %134 : memref<1x1x104x4xbf16, #tpu.memory_space<vmem>> -> memref<104x4xbf16, #tpu.memory_space<vmem>>
      %136 = tpu.memref_slice %arg11[%11, %c0_i32_142] : memref<2x4x!tpu.dma_semaphore, #tpu.memory_space<semaphore_mem>> -> memref<1x1x!tpu.dma_semaphore, #tpu.memory_space<semaphore_mem>>
      %137 = tpu.memref_squeeze %136 : memref<1x1x!tpu.dma_semaphore, #tpu.memory_space<semaphore_mem>> -> memref<!tpu.dma_semaphore, #tpu.memory_space<semaphore_mem>>
      tpu.enqueue_dma source(%133 : memref<104x4xbf16, #tpu.memory_space<any>>) target(%135 : memref<104x4xbf16, #tpu.memory_space<vmem>>) target_semaphore(%137 : memref<!tpu.dma_semaphore, #tpu.memory_space<semaphore_mem>>)
      %c88_i32_146 = arith.constant 88 : i32
      %138 = arith.muli %1, %c88_i32_146 : i32
      %139 = tpu.assume_multiple %138, 8 : i32
      %c1_i32_147 = arith.constant 1 : i32
      %c1_i32_148 = arith.constant 1 : i32
      %c0_i32_149 = arith.constant 0 : i32
      %140 = tpu.memref_slice %arg3[%139, %c0_i32_149] : memref<192x4xbf16, #tpu.memory_space<any>> -> memref<104x4xbf16, #tpu.memory_space<any>>
      %c0_i32_150 = arith.constant 0 : i32
      %c0_i32_151 = arith.constant 0 : i32
      %141 = tpu.memref_slice %arg10[%11, %c1_i32_147, %c0_i32_150, %c0_i32_151] : memref<2x4x104x4xbf16, #tpu.memory_space<vmem>> -> memref<1x1x104x4xbf16, #tpu.memory_space<vmem>>
      %142 = tpu.memref_squeeze %141 : memref<1x1x104x4xbf16, #tpu.memory_space<vmem>> -> memref<104x4xbf16, #tpu.memory_space<vmem>>
      %143 = tpu.memref_slice %arg11[%11, %c1_i32_148] : memref<2x4x!tpu.dma_semaphore, #tpu.memory_space<semaphore_mem>> -> memref<1x1x!tpu.dma_semaphore, #tpu.memory_space<semaphore_mem>>
      %144 = tpu.memref_squeeze %143 : memref<1x1x!tpu.dma_semaphore, #tpu.memory_space<semaphore_mem>> -> memref<!tpu.dma_semaphore, #tpu.memory_space<semaphore_mem>>
      tpu.enqueue_dma source(%140 : memref<104x4xbf16, #tpu.memory_space<any>>) target(%142 : memref<104x4xbf16, #tpu.memory_space<vmem>>) target_semaphore(%144 : memref<!tpu.dma_semaphore, #tpu.memory_space<semaphore_mem>>)
      %c88_i32_152 = arith.constant 88 : i32
      %145 = arith.muli %1, %c88_i32_152 : i32
      %146 = tpu.assume_multiple %145, 8 : i32
      %c2_i32_153 = arith.constant 2 : i32
      %c2_i32_154 = arith.constant 2 : i32
      %c0_i32_155 = arith.constant 0 : i32
      %147 = tpu.memref_slice %arg4[%146, %c0_i32_155] : memref<192x4xbf16, #tpu.memory_space<any>> -> memref<104x4xbf16, #tpu.memory_space<any>>
      %c0_i32_156 = arith.constant 0 : i32
      %c0_i32_157 = arith.constant 0 : i32
      %148 = tpu.memref_slice %arg10[%11, %c2_i32_153, %c0_i32_156, %c0_i32_157] : memref<2x4x104x4xbf16, #tpu.memory_space<vmem>> -> memref<1x1x104x4xbf16, #tpu.memory_space<vmem>>
      %149 = tpu.memref_squeeze %148 : memref<1x1x104x4xbf16, #tpu.memory_space<vmem>> -> memref<104x4xbf16, #tpu.memory_space<vmem>>
      %150 = tpu.memref_slice %arg11[%11, %c2_i32_154] : memref<2x4x!tpu.dma_semaphore, #tpu.memory_space<semaphore_mem>> -> memref<1x1x!tpu.dma_semaphore, #tpu.memory_space<semaphore_mem>>
      %151 = tpu.memref_squeeze %150 : memref<1x1x!tpu.dma_semaphore, #tpu.memory_space<semaphore_mem>> -> memref<!tpu.dma_semaphore, #tpu.memory_space<semaphore_mem>>
      tpu.enqueue_dma source(%147 : memref<104x4xbf16, #tpu.memory_space<any>>) target(%149 : memref<104x4xbf16, #tpu.memory_space<vmem>>) target_semaphore(%151 : memref<!tpu.dma_semaphore, #tpu.memory_space<semaphore_mem>>)
      %c88_i32_158 = arith.constant 88 : i32
      %152 = arith.muli %1, %c88_i32_158 : i32
      %153 = tpu.assume_multiple %152, 8 : i32
      %c3_i32_159 = arith.constant 3 : i32
      %c3_i32_160 = arith.constant 3 : i32
      %c0_i32_161 = arith.constant 0 : i32
      %154 = tpu.memref_slice %arg5[%153, %c0_i32_161] : memref<192x4xbf16, #tpu.memory_space<any>> -> memref<104x4xbf16, #tpu.memory_space<any>>
      %c0_i32_162 = arith.constant 0 : i32
      %c0_i32_163 = arith.constant 0 : i32
      %155 = tpu.memref_slice %arg10[%11, %c3_i32_159, %c0_i32_162, %c0_i32_163] : memref<2x4x104x4xbf16, #tpu.memory_space<vmem>> -> memref<1x1x104x4xbf16, #tpu.memory_space<vmem>>
      %156 = tpu.memref_squeeze %155 : memref<1x1x104x4xbf16, #tpu.memory_space<vmem>> -> memref<104x4xbf16, #tpu.memory_space<vmem>>
      %157 = tpu.memref_slice %arg11[%11, %c3_i32_160] : memref<2x4x!tpu.dma_semaphore, #tpu.memory_space<semaphore_mem>> -> memref<1x1x!tpu.dma_semaphore, #tpu.memory_space<semaphore_mem>>
      %158 = tpu.memref_squeeze %157 : memref<1x1x!tpu.dma_semaphore, #tpu.memory_space<semaphore_mem>> -> memref<!tpu.dma_semaphore, #tpu.memory_space<semaphore_mem>>
      tpu.enqueue_dma source(%154 : memref<104x4xbf16, #tpu.memory_space<any>>) target(%156 : memref<104x4xbf16, #tpu.memory_space<vmem>>) target_semaphore(%158 : memref<!tpu.dma_semaphore, #tpu.memory_space<semaphore_mem>>)
    } else {
    }
    %c1_i32_6 = arith.constant 1 : i32
    %15 = arith.addi %arg1, %c1_i32_6 : i32
    %c1_i32_7 = arith.constant 1 : i32
    %16 = arith.cmpi slt, %15, %c1_i32_7 : i32
    %17 = arith.extui %16 : i1 to i32
    %c0_i32_8 = arith.constant 0 : i32
    %18 = arith.cmpi ne, %17, %c0_i32_8 : i32
    scf.if %18 {
      %c1_i32_140 = arith.constant 1 : i32
      %131 = arith.addi %1, %c1_i32_140 : i32
      %c1_i32_141 = arith.constant 1 : i32
      %132 = arith.subi %c1_i32_141, %11 : i32
      %c88_i32_142 = arith.constant 88 : i32
      %133 = arith.muli %131, %c88_i32_142 : i32
      %134 = tpu.assume_multiple %133, 8 : i32
      %c0_i32_143 = arith.constant 0 : i32
      %c0_i32_144 = arith.constant 0 : i32
      %c0_i32_145 = arith.constant 0 : i32
      %135 = tpu.memref_slice %arg2[%134, %c0_i32_145] : memref<192x4xbf16, #tpu.memory_space<any>> -> memref<104x4xbf16, #tpu.memory_space<any>>
      %c0_i32_146 = arith.constant 0 : i32
      %c0_i32_147 = arith.constant 0 : i32
      %136 = tpu.memref_slice %arg10[%132, %c0_i32_143, %c0_i32_146, %c0_i32_147] : memref<2x4x104x4xbf16, #tpu.memory_space<vmem>> -> memref<1x1x104x4xbf16, #tpu.memory_space<vmem>>
      %137 = tpu.memref_squeeze %136 : memref<1x1x104x4xbf16, #tpu.memory_space<vmem>> -> memref<104x4xbf16, #tpu.memory_space<vmem>>
      %138 = tpu.memref_slice %arg11[%132, %c0_i32_144] : memref<2x4x!tpu.dma_semaphore, #tpu.memory_space<semaphore_mem>> -> memref<1x1x!tpu.dma_semaphore, #tpu.memory_space<semaphore_mem>>
      %139 = tpu.memref_squeeze %138 : memref<1x1x!tpu.dma_semaphore, #tpu.memory_space<semaphore_mem>> -> memref<!tpu.dma_semaphore, #tpu.memory_space<semaphore_mem>>
      tpu.enqueue_dma source(%135 : memref<104x4xbf16, #tpu.memory_space<any>>) target(%137 : memref<104x4xbf16, #tpu.memory_space<vmem>>) target_semaphore(%139 : memref<!tpu.dma_semaphore, #tpu.memory_space<semaphore_mem>>)
      %c88_i32_148 = arith.constant 88 : i32
      %140 = arith.muli %131, %c88_i32_148 : i32
      %141 = tpu.assume_multiple %140, 8 : i32
      %c1_i32_149 = arith.constant 1 : i32
      %c1_i32_150 = arith.constant 1 : i32
      %c0_i32_151 = arith.constant 0 : i32
      %142 = tpu.memref_slice %arg3[%141, %c0_i32_151] : memref<192x4xbf16, #tpu.memory_space<any>> -> memref<104x4xbf16, #tpu.memory_space<any>>
      %c0_i32_152 = arith.constant 0 : i32
      %c0_i32_153 = arith.constant 0 : i32
      %143 = tpu.memref_slice %arg10[%132, %c1_i32_149, %c0_i32_152, %c0_i32_153] : memref<2x4x104x4xbf16, #tpu.memory_space<vmem>> -> memref<1x1x104x4xbf16, #tpu.memory_space<vmem>>
      %144 = tpu.memref_squeeze %143 : memref<1x1x104x4xbf16, #tpu.memory_space<vmem>> -> memref<104x4xbf16, #tpu.memory_space<vmem>>
      %145 = tpu.memref_slice %arg11[%132, %c1_i32_150] : memref<2x4x!tpu.dma_semaphore, #tpu.memory_space<semaphore_mem>> -> memref<1x1x!tpu.dma_semaphore, #tpu.memory_space<semaphore_mem>>
      %146 = tpu.memref_squeeze %145 : memref<1x1x!tpu.dma_semaphore, #tpu.memory_space<semaphore_mem>> -> memref<!tpu.dma_semaphore, #tpu.memory_space<semaphore_mem>>
      tpu.enqueue_dma source(%142 : memref<104x4xbf16, #tpu.memory_space<any>>) target(%144 : memref<104x4xbf16, #tpu.memory_space<vmem>>) target_semaphore(%146 : memref<!tpu.dma_semaphore, #tpu.memory_space<semaphore_mem>>)
      %c88_i32_154 = arith.constant 88 : i32
      %147 = arith.muli %131, %c88_i32_154 : i32
      %148 = tpu.assume_multiple %147, 8 : i32
      %c2_i32_155 = arith.constant 2 : i32
      %c2_i32_156 = arith.constant 2 : i32
      %c0_i32_157 = arith.constant 0 : i32
      %149 = tpu.memref_slice %arg4[%148, %c0_i32_157] : memref<192x4xbf16, #tpu.memory_space<any>> -> memref<104x4xbf16, #tpu.memory_space<any>>
      %c0_i32_158 = arith.constant 0 : i32
      %c0_i32_159 = arith.constant 0 : i32
      %150 = tpu.memref_slice %arg10[%132, %c2_i32_155, %c0_i32_158, %c0_i32_159] : memref<2x4x104x4xbf16, #tpu.memory_space<vmem>> -> memref<1x1x104x4xbf16, #tpu.memory_space<vmem>>
      %151 = tpu.memref_squeeze %150 : memref<1x1x104x4xbf16, #tpu.memory_space<vmem>> -> memref<104x4xbf16, #tpu.memory_space<vmem>>
      %152 = tpu.memref_slice %arg11[%132, %c2_i32_156] : memref<2x4x!tpu.dma_semaphore, #tpu.memory_space<semaphore_mem>> -> memref<1x1x!tpu.dma_semaphore, #tpu.memory_space<semaphore_mem>>
      %153 = tpu.memref_squeeze %152 : memref<1x1x!tpu.dma_semaphore, #tpu.memory_space<semaphore_mem>> -> memref<!tpu.dma_semaphore, #tpu.memory_space<semaphore_mem>>
      tpu.enqueue_dma source(%149 : memref<104x4xbf16, #tpu.memory_space<any>>) target(%151 : memref<104x4xbf16, #tpu.memory_space<vmem>>) target_semaphore(%153 : memref<!tpu.dma_semaphore, #tpu.memory_space<semaphore_mem>>)
      %c88_i32_160 = arith.constant 88 : i32
      %154 = arith.muli %131, %c88_i32_160 : i32
      %155 = tpu.assume_multiple %154, 8 : i32
      %c3_i32_161 = arith.constant 3 : i32
      %c3_i32_162 = arith.constant 3 : i32
      %c0_i32_163 = arith.constant 0 : i32
      %156 = tpu.memref_slice %arg5[%155, %c0_i32_163] : memref<192x4xbf16, #tpu.memory_space<any>> -> memref<104x4xbf16, #tpu.memory_space<any>>
      %c0_i32_164 = arith.constant 0 : i32
      %c0_i32_165 = arith.constant 0 : i32
      %157 = tpu.memref_slice %arg10[%132, %c3_i32_161, %c0_i32_164, %c0_i32_165] : memref<2x4x104x4xbf16, #tpu.memory_space<vmem>> -> memref<1x1x104x4xbf16, #tpu.memory_space<vmem>>
      %158 = tpu.memref_squeeze %157 : memref<1x1x104x4xbf16, #tpu.memory_space<vmem>> -> memref<104x4xbf16, #tpu.memory_space<vmem>>
      %159 = tpu.memref_slice %arg11[%132, %c3_i32_162] : memref<2x4x!tpu.dma_semaphore, #tpu.memory_space<semaphore_mem>> -> memref<1x1x!tpu.dma_semaphore, #tpu.memory_space<semaphore_mem>>
      %160 = tpu.memref_squeeze %159 : memref<1x1x!tpu.dma_semaphore, #tpu.memory_space<semaphore_mem>> -> memref<!tpu.dma_semaphore, #tpu.memory_space<semaphore_mem>>
      tpu.enqueue_dma source(%156 : memref<104x4xbf16, #tpu.memory_space<any>>) target(%158 : memref<104x4xbf16, #tpu.memory_space<vmem>>) target_semaphore(%160 : memref<!tpu.dma_semaphore, #tpu.memory_space<semaphore_mem>>)
    } else {
    }
    %c88_i32 = arith.constant 88 : i32
    %19 = arith.muli %1, %c88_i32 : i32
    %20 = tpu.assume_multiple %19, 8 : i32
    %c0_i32_9 = arith.constant 0 : i32
    %c0_i32_10 = arith.constant 0 : i32
    %c0_i32_11 = arith.constant 0 : i32
    %21 = tpu.memref_slice %arg2[%20, %c0_i32_11] : memref<192x4xbf16, #tpu.memory_space<any>> -> memref<104x4xbf16, #tpu.memory_space<any>>
    %c0_i32_12 = arith.constant 0 : i32
    %c0_i32_13 = arith.constant 0 : i32
    %22 = tpu.memref_slice %arg10[%11, %c0_i32_9, %c0_i32_12, %c0_i32_13] : memref<2x4x104x4xbf16, #tpu.memory_space<vmem>> -> memref<1x1x104x4xbf16, #tpu.memory_space<vmem>>
    %23 = tpu.memref_squeeze %22 : memref<1x1x104x4xbf16, #tpu.memory_space<vmem>> -> memref<104x4xbf16, #tpu.memory_space<vmem>>
    %24 = tpu.memref_slice %arg11[%11, %c0_i32_10] : memref<2x4x!tpu.dma_semaphore, #tpu.memory_space<semaphore_mem>> -> memref<1x1x!tpu.dma_semaphore, #tpu.memory_space<semaphore_mem>>
    %25 = tpu.memref_squeeze %24 : memref<1x1x!tpu.dma_semaphore, #tpu.memory_space<semaphore_mem>> -> memref<!tpu.dma_semaphore, #tpu.memory_space<semaphore_mem>>
    tpu.wait_dma2 semaphore(%25 : memref<!tpu.dma_semaphore, #tpu.memory_space<semaphore_mem>>) src(%21 : memref<104x4xbf16, #tpu.memory_space<any>>) dst(%23 : memref<104x4xbf16, #tpu.memory_space<vmem>>)
    %c0_i32_14 = arith.constant 0 : i32
    %c0_i32_15 = arith.constant 0 : i32
    %c0_i32_16 = arith.constant 0 : i32
    %26 = tpu.memref_slice %arg10[%11, %c0_i32_14, %c0_i32_15, %c0_i32_16] : memref<2x4x104x4xbf16, #tpu.memory_space<vmem>> -> memref<1x1x104x4xbf16, #tpu.memory_space<vmem>>
    %27 = tpu.memref_squeeze %26 : memref<1x1x104x4xbf16, #tpu.memory_space<vmem>> -> memref<104x4xbf16, #tpu.memory_space<vmem>>
    %c0 = arith.constant 0 : index
    %c0_17 = arith.constant 0 : index
    %28 = vector.load %27[%c0, %c0_17] : memref<104x4xbf16, #tpu.memory_space<vmem>>, vector<88x4xbf16>
    %c0_18 = arith.constant 0 : index
    %c0_19 = arith.constant 0 : index
    %c0_20 = arith.constant 0 : index
    %29 = vector.load %arg6[%c0_18, %c0_19, %c0_20] : memref<9x4x128xbf16, #tpu.memory_space<vmem>>, vector<1x4x128xbf16>
    %30 = vector.shape_cast %29 : vector<1x4x128xbf16> to vector<4x128xbf16>
    %cst = arith.constant dense<0.000000e+00> : vector<88x128xf32>
    %31 = tpu.matmul %28, %30, %cst {dimension_numbers = #tpu.dot_dimension_numbers<[1], [0], [0], [1], [0, 0, 1, 1], [], []>} : vector<88x4xbf16>, vector<4x128xbf16>, vector<88x128xf32> -> vector<88x128xf32>
    %c0_21 = arith.constant 0 : index
    %c0_22 = arith.constant 0 : index
    %32 = vector.load %arg9[%c0_21, %c0_22] : memref<88x128xf32, #tpu.memory_space<vmem>>, vector<88x128xf32>
    tpu.vector_store %arg9[%c0_21, %c0_22], %31 {strides = array<i32>} : memref<88x128xf32, #tpu.memory_space<vmem>>, vector<88x128xf32>,
    %c0_i32_23 = arith.constant 0 : i32
    %c0_i32_24 = arith.constant 0 : i32
    %c0_i32_25 = arith.constant 0 : i32
    %33 = tpu.memref_slice %arg10[%11, %c0_i32_23, %c0_i32_24, %c0_i32_25] : memref<2x4x104x4xbf16, #tpu.memory_space<vmem>> -> memref<1x1x104x4xbf16, #tpu.memory_space<vmem>>
    %34 = tpu.memref_squeeze %33 : memref<1x1x104x4xbf16, #tpu.memory_space<vmem>> -> memref<104x4xbf16, #tpu.memory_space<vmem>>
    %c1 = arith.constant 1 : index
    %c0_26 = arith.constant 0 : index
    %35 = vector.load %34[%c1, %c0_26] : memref<104x4xbf16, #tpu.memory_space<vmem>>, vector<88x4xbf16>
    %c2 = arith.constant 2 : index
    %c0_27 = arith.constant 0 : index
    %c0_28 = arith.constant 0 : index
    %36 = vector.load %arg6[%c2, %c0_27, %c0_28] : memref<9x4x128xbf16, #tpu.memory_space<vmem>>, vector<1x4x128xbf16>
    %37 = vector.shape_cast %36 : vector<1x4x128xbf16> to vector<4x128xbf16>
    %cst_29 = arith.constant dense<0.000000e+00> : vector<88x128xf32>
    %38 = tpu.matmul %35, %37, %cst_29 {dimension_numbers = #tpu.dot_dimension_numbers<[1], [0], [0], [1], [0, 0, 1, 1], [], []>} : vector<88x4xbf16>, vector<4x128xbf16>, vector<88x128xf32> -> vector<88x128xf32>
    %c0_30 = arith.constant 0 : index
    %c0_31 = arith.constant 0 : index
    %39 = vector.load %arg9[%c0_30, %c0_31] : memref<88x128xf32, #tpu.memory_space<vmem>>, vector<88x128xf32>
    %40 = arith.addf %39, %38 : vector<88x128xf32>
    %c0_32 = arith.constant 0 : index
    %c0_33 = arith.constant 0 : index
    %41 = vector.load %arg9[%c0_32, %c0_33] : memref<88x128xf32, #tpu.memory_space<vmem>>, vector<88x128xf32>
    tpu.vector_store %arg9[%c0_32, %c0_33], %40 {strides = array<i32>} : memref<88x128xf32, #tpu.memory_space<vmem>>, vector<88x128xf32>,
    %c0_i32_34 = arith.constant 0 : i32
    %c0_i32_35 = arith.constant 0 : i32
    %c0_i32_36 = arith.constant 0 : i32
    %42 = tpu.memref_slice %arg10[%11, %c0_i32_34, %c0_i32_35, %c0_i32_36] : memref<2x4x104x4xbf16, #tpu.memory_space<vmem>> -> memref<1x1x104x4xbf16, #tpu.memory_space<vmem>>
    %43 = tpu.memref_squeeze %42 : memref<1x1x104x4xbf16, #tpu.memory_space<vmem>> -> memref<104x4xbf16, #tpu.memory_space<vmem>>
    %c9 = arith.constant 9 : index
    %c0_37 = arith.constant 0 : index
    %44 = vector.load %43[%c9, %c0_37] : memref<104x4xbf16, #tpu.memory_space<vmem>>, vector<88x4xbf16>
    %c6 = arith.constant 6 : index
    %c0_38 = arith.constant 0 : index
    %c0_39 = arith.constant 0 : index
    %45 = vector.load %arg6[%c6, %c0_38, %c0_39] : memref<9x4x128xbf16, #tpu.memory_space<vmem>>, vector<1x4x128xbf16>
    %46 = vector.shape_cast %45 : vector<1x4x128xbf16> to vector<4x128xbf16>
    %cst_40 = arith.constant dense<0.000000e+00> : vector<88x128xf32>
    %47 = tpu.matmul %44, %46, %cst_40 {dimension_numbers = #tpu.dot_dimension_numbers<[1], [0], [0], [1], [0, 0, 1, 1], [], []>} : vector<88x4xbf16>, vector<4x128xbf16>, vector<88x128xf32> -> vector<88x128xf32>
    %c0_41 = arith.constant 0 : index
    %c0_42 = arith.constant 0 : index
    %48 = vector.load %arg9[%c0_41, %c0_42] : memref<88x128xf32, #tpu.memory_space<vmem>>, vector<88x128xf32>
    %49 = arith.addf %48, %47 : vector<88x128xf32>
    %c0_43 = arith.constant 0 : index
    %c0_44 = arith.constant 0 : index
    %50 = vector.load %arg9[%c0_43, %c0_44] : memref<88x128xf32, #tpu.memory_space<vmem>>, vector<88x128xf32>
    tpu.vector_store %arg9[%c0_43, %c0_44], %49 {strides = array<i32>} : memref<88x128xf32, #tpu.memory_space<vmem>>, vector<88x128xf32>,
    %c0_i32_45 = arith.constant 0 : i32
    %c0_i32_46 = arith.constant 0 : i32
    %c0_i32_47 = arith.constant 0 : i32
    %51 = tpu.memref_slice %arg10[%11, %c0_i32_45, %c0_i32_46, %c0_i32_47] : memref<2x4x104x4xbf16, #tpu.memory_space<vmem>> -> memref<1x1x104x4xbf16, #tpu.memory_space<vmem>>
    %52 = tpu.memref_squeeze %51 : memref<1x1x104x4xbf16, #tpu.memory_space<vmem>> -> memref<104x4xbf16, #tpu.memory_space<vmem>>
    %c10 = arith.constant 10 : index
    %c0_48 = arith.constant 0 : index
    %53 = vector.load %52[%c10, %c0_48] : memref<104x4xbf16, #tpu.memory_space<vmem>>, vector<88x4xbf16>
    %c8 = arith.constant 8 : index
    %c0_49 = arith.constant 0 : index
    %c0_50 = arith.constant 0 : index
    %54 = vector.load %arg6[%c8, %c0_49, %c0_50] : memref<9x4x128xbf16, #tpu.memory_space<vmem>>, vector<1x4x128xbf16>
    %55 = vector.shape_cast %54 : vector<1x4x128xbf16> to vector<4x128xbf16>
    %cst_51 = arith.constant dense<0.000000e+00> : vector<88x128xf32>
    %56 = tpu.matmul %53, %55, %cst_51 {dimension_numbers = #tpu.dot_dimension_numbers<[1], [0], [0], [1], [0, 0, 1, 1], [], []>} : vector<88x4xbf16>, vector<4x128xbf16>, vector<88x128xf32> -> vector<88x128xf32>
    %c0_52 = arith.constant 0 : index
    %c0_53 = arith.constant 0 : index
    %57 = vector.load %arg9[%c0_52, %c0_53] : memref<88x128xf32, #tpu.memory_space<vmem>>, vector<88x128xf32>
    %58 = arith.addf %57, %56 : vector<88x128xf32>
    %c0_54 = arith.constant 0 : index
    %c0_55 = arith.constant 0 : index
    %59 = vector.load %arg9[%c0_54, %c0_55] : memref<88x128xf32, #tpu.memory_space<vmem>>, vector<88x128xf32>
    tpu.vector_store %arg9[%c0_54, %c0_55], %58 {strides = array<i32>} : memref<88x128xf32, #tpu.memory_space<vmem>>, vector<88x128xf32>,
    %c88_i32_56 = arith.constant 88 : i32
    %60 = arith.muli %1, %c88_i32_56 : i32
    %61 = tpu.assume_multiple %60, 8 : i32
    %c1_i32_57 = arith.constant 1 : i32
    %c1_i32_58 = arith.constant 1 : i32
    %c0_i32_59 = arith.constant 0 : i32
    %62 = tpu.memref_slice %arg3[%61, %c0_i32_59] : memref<192x4xbf16, #tpu.memory_space<any>> -> memref<104x4xbf16, #tpu.memory_space<any>>
    %c0_i32_60 = arith.constant 0 : i32
    %c0_i32_61 = arith.constant 0 : i32
    %63 = tpu.memref_slice %arg10[%11, %c1_i32_57, %c0_i32_60, %c0_i32_61] : memref<2x4x104x4xbf16, #tpu.memory_space<vmem>> -> memref<1x1x104x4xbf16, #tpu.memory_space<vmem>>
    %64 = tpu.memref_squeeze %63 : memref<1x1x104x4xbf16, #tpu.memory_space<vmem>> -> memref<104x4xbf16, #tpu.memory_space<vmem>>
    %65 = tpu.memref_slice %arg11[%11, %c1_i32_58] : memref<2x4x!tpu.dma_semaphore, #tpu.memory_space<semaphore_mem>> -> memref<1x1x!tpu.dma_semaphore, #tpu.memory_space<semaphore_mem>>
    %66 = tpu.memref_squeeze %65 : memref<1x1x!tpu.dma_semaphore, #tpu.memory_space<semaphore_mem>> -> memref<!tpu.dma_semaphore, #tpu.memory_space<semaphore_mem>>
    tpu.wait_dma2 semaphore(%66 : memref<!tpu.dma_semaphore, #tpu.memory_space<semaphore_mem>>) src(%62 : memref<104x4xbf16, #tpu.memory_space<any>>) dst(%64 : memref<104x4xbf16, #tpu.memory_space<vmem>>)
    %c1_i32_62 = arith.constant 1 : i32
    %c0_i32_63 = arith.constant 0 : i32
    %c0_i32_64 = arith.constant 0 : i32
    %67 = tpu.memref_slice %arg10[%11, %c1_i32_62, %c0_i32_63, %c0_i32_64] : memref<2x4x104x4xbf16, #tpu.memory_space<vmem>> -> memref<1x1x104x4xbf16, #tpu.memory_space<vmem>>
    %68 = tpu.memref_squeeze %67 : memref<1x1x104x4xbf16, #tpu.memory_space<vmem>> -> memref<104x4xbf16, #tpu.memory_space<vmem>>
    %c0_65 = arith.constant 0 : index
    %c0_66 = arith.constant 0 : index
    %69 = vector.load %68[%c0_65, %c0_66] : memref<104x4xbf16, #tpu.memory_space<vmem>>, vector<88x4xbf16>
    %c1_67 = arith.constant 1 : index
    %c0_68 = arith.constant 0 : index
    %c0_69 = arith.constant 0 : index
    %70 = vector.load %arg6[%c1_67, %c0_68, %c0_69] : memref<9x4x128xbf16, #tpu.memory_space<vmem>>, vector<1x4x128xbf16>
    %71 = vector.shape_cast %70 : vector<1x4x128xbf16> to vector<4x128xbf16>
    %cst_70 = arith.constant dense<0.000000e+00> : vector<88x128xf32>
    %72 = tpu.matmul %69, %71, %cst_70 {dimension_numbers = #tpu.dot_dimension_numbers<[1], [0], [0], [1], [0, 0, 1, 1], [], []>} : vector<88x4xbf16>, vector<4x128xbf16>, vector<88x128xf32> -> vector<88x128xf32>
    %c0_71 = arith.constant 0 : index
    %c0_72 = arith.constant 0 : index
    %73 = vector.load %arg9[%c0_71, %c0_72] : memref<88x128xf32, #tpu.memory_space<vmem>>, vector<88x128xf32>
    %74 = arith.addf %73, %72 : vector<88x128xf32>
    %c0_73 = arith.constant 0 : index
    %c0_74 = arith.constant 0 : index
    %75 = vector.load %arg9[%c0_73, %c0_74] : memref<88x128xf32, #tpu.memory_space<vmem>>, vector<88x128xf32>
    tpu.vector_store %arg9[%c0_73, %c0_74], %74 {strides = array<i32>} : memref<88x128xf32, #tpu.memory_space<vmem>>, vector<88x128xf32>,
    %c1_i32_75 = arith.constant 1 : i32
    %c0_i32_76 = arith.constant 0 : i32
    %c0_i32_77 = arith.constant 0 : i32
    %76 = tpu.memref_slice %arg10[%11, %c1_i32_75, %c0_i32_76, %c0_i32_77] : memref<2x4x104x4xbf16, #tpu.memory_space<vmem>> -> memref<1x1x104x4xbf16, #tpu.memory_space<vmem>>
    %77 = tpu.memref_squeeze %76 : memref<1x1x104x4xbf16, #tpu.memory_space<vmem>> -> memref<104x4xbf16, #tpu.memory_space<vmem>>
    %c9_78 = arith.constant 9 : index
    %c0_79 = arith.constant 0 : index
    %78 = vector.load %77[%c9_78, %c0_79] : memref<104x4xbf16, #tpu.memory_space<vmem>>, vector<88x4xbf16>
    %c7 = arith.constant 7 : index
    %c0_80 = arith.constant 0 : index
    %c0_81 = arith.constant 0 : index
    %79 = vector.load %arg6[%c7, %c0_80, %c0_81] : memref<9x4x128xbf16, #tpu.memory_space<vmem>>, vector<1x4x128xbf16>
    %80 = vector.shape_cast %79 : vector<1x4x128xbf16> to vector<4x128xbf16>
    %cst_82 = arith.constant dense<0.000000e+00> : vector<88x128xf32>
    %81 = tpu.matmul %78, %80, %cst_82 {dimension_numbers = #tpu.dot_dimension_numbers<[1], [0], [0], [1], [0, 0, 1, 1], [], []>} : vector<88x4xbf16>, vector<4x128xbf16>, vector<88x128xf32> -> vector<88x128xf32>
    %c0_83 = arith.constant 0 : index
    %c0_84 = arith.constant 0 : index
    %82 = vector.load %arg9[%c0_83, %c0_84] : memref<88x128xf32, #tpu.memory_space<vmem>>, vector<88x128xf32>
    %83 = arith.addf %82, %81 : vector<88x128xf32>
    %c0_85 = arith.constant 0 : index
    %c0_86 = arith.constant 0 : index
    %84 = vector.load %arg9[%c0_85, %c0_86] : memref<88x128xf32, #tpu.memory_space<vmem>>, vector<88x128xf32>
    tpu.vector_store %arg9[%c0_85, %c0_86], %83 {strides = array<i32>} : memref<88x128xf32, #tpu.memory_space<vmem>>, vector<88x128xf32>,
    %c88_i32_87 = arith.constant 88 : i32
    %85 = arith.muli %1, %c88_i32_87 : i32
    %86 = tpu.assume_multiple %85, 8 : i32
    %c2_i32_88 = arith.constant 2 : i32
    %c2_i32_89 = arith.constant 2 : i32
    %c0_i32_90 = arith.constant 0 : i32
    %87 = tpu.memref_slice %arg4[%86, %c0_i32_90] : memref<192x4xbf16, #tpu.memory_space<any>> -> memref<104x4xbf16, #tpu.memory_space<any>>
    %c0_i32_91 = arith.constant 0 : i32
    %c0_i32_92 = arith.constant 0 : i32
    %88 = tpu.memref_slice %arg10[%11, %c2_i32_88, %c0_i32_91, %c0_i32_92] : memref<2x4x104x4xbf16, #tpu.memory_space<vmem>> -> memref<1x1x104x4xbf16, #tpu.memory_space<vmem>>
    %89 = tpu.memref_squeeze %88 : memref<1x1x104x4xbf16, #tpu.memory_space<vmem>> -> memref<104x4xbf16, #tpu.memory_space<vmem>>
    %90 = tpu.memref_slice %arg11[%11, %c2_i32_89] : memref<2x4x!tpu.dma_semaphore, #tpu.memory_space<semaphore_mem>> -> memref<1x1x!tpu.dma_semaphore, #tpu.memory_space<semaphore_mem>>
    %91 = tpu.memref_squeeze %90 : memref<1x1x!tpu.dma_semaphore, #tpu.memory_space<semaphore_mem>> -> memref<!tpu.dma_semaphore, #tpu.memory_space<semaphore_mem>>
    tpu.wait_dma2 semaphore(%91 : memref<!tpu.dma_semaphore, #tpu.memory_space<semaphore_mem>>) src(%87 : memref<104x4xbf16, #tpu.memory_space<any>>) dst(%89 : memref<104x4xbf16, #tpu.memory_space<vmem>>)
    %c2_i32_93 = arith.constant 2 : i32
    %c0_i32_94 = arith.constant 0 : i32
    %c0_i32_95 = arith.constant 0 : i32
    %92 = tpu.memref_slice %arg10[%11, %c2_i32_93, %c0_i32_94, %c0_i32_95] : memref<2x4x104x4xbf16, #tpu.memory_space<vmem>> -> memref<1x1x104x4xbf16, #tpu.memory_space<vmem>>
    %93 = tpu.memref_squeeze %92 : memref<1x1x104x4xbf16, #tpu.memory_space<vmem>> -> memref<104x4xbf16, #tpu.memory_space<vmem>>
    %c0_96 = arith.constant 0 : index
    %c0_97 = arith.constant 0 : index
    %94 = vector.load %93[%c0_96, %c0_97] : memref<104x4xbf16, #tpu.memory_space<vmem>>, vector<88x4xbf16>
    %c3 = arith.constant 3 : index
    %c0_98 = arith.constant 0 : index
    %c0_99 = arith.constant 0 : index
    %95 = vector.load %arg6[%c3, %c0_98, %c0_99] : memref<9x4x128xbf16, #tpu.memory_space<vmem>>, vector<1x4x128xbf16>
    %96 = vector.shape_cast %95 : vector<1x4x128xbf16> to vector<4x128xbf16>
    %cst_100 = arith.constant dense<0.000000e+00> : vector<88x128xf32>
    %97 = tpu.matmul %94, %96, %cst_100 {dimension_numbers = #tpu.dot_dimension_numbers<[1], [0], [0], [1], [0, 0, 1, 1], [], []>} : vector<88x4xbf16>, vector<4x128xbf16>, vector<88x128xf32> -> vector<88x128xf32>
    %c0_101 = arith.constant 0 : index
    %c0_102 = arith.constant 0 : index
    %98 = vector.load %arg9[%c0_101, %c0_102] : memref<88x128xf32, #tpu.memory_space<vmem>>, vector<88x128xf32>
    %99 = arith.addf %98, %97 : vector<88x128xf32>
    %c0_103 = arith.constant 0 : index
    %c0_104 = arith.constant 0 : index
    %100 = vector.load %arg9[%c0_103, %c0_104] : memref<88x128xf32, #tpu.memory_space<vmem>>, vector<88x128xf32>
    tpu.vector_store %arg9[%c0_103, %c0_104], %99 {strides = array<i32>} : memref<88x128xf32, #tpu.memory_space<vmem>>, vector<88x128xf32>,
    %c2_i32_105 = arith.constant 2 : i32
    %c0_i32_106 = arith.constant 0 : i32
    %c0_i32_107 = arith.constant 0 : i32
    %101 = tpu.memref_slice %arg10[%11, %c2_i32_105, %c0_i32_106, %c0_i32_107] : memref<2x4x104x4xbf16, #tpu.memory_space<vmem>> -> memref<1x1x104x4xbf16, #tpu.memory_space<vmem>>
    %102 = tpu.memref_squeeze %101 : memref<1x1x104x4xbf16, #tpu.memory_space<vmem>> -> memref<104x4xbf16, #tpu.memory_space<vmem>>
    %c1_108 = arith.constant 1 : index
    %c0_109 = arith.constant 0 : index
    %103 = vector.load %102[%c1_108, %c0_109] : memref<104x4xbf16, #tpu.memory_space<vmem>>, vector<88x4xbf16>
    %c5 = arith.constant 5 : index
    %c0_110 = arith.constant 0 : index
    %c0_111 = arith.constant 0 : index
    %104 = vector.load %arg6[%c5, %c0_110, %c0_111] : memref<9x4x128xbf16, #tpu.memory_space<vmem>>, vector<1x4x128xbf16>
    %105 = vector.shape_cast %104 : vector<1x4x128xbf16> to vector<4x128xbf16>
    %cst_112 = arith.constant dense<0.000000e+00> : vector<88x128xf32>
    %106 = tpu.matmul %103, %105, %cst_112 {dimension_numbers = #tpu.dot_dimension_numbers<[1], [0], [0], [1], [0, 0, 1, 1], [], []>} : vector<88x4xbf16>, vector<4x128xbf16>, vector<88x128xf32> -> vector<88x128xf32>
    %c0_113 = arith.constant 0 : index
    %c0_114 = arith.constant 0 : index
    %107 = vector.load %arg9[%c0_113, %c0_114] : memref<88x128xf32, #tpu.memory_space<vmem>>, vector<88x128xf32>
    %108 = arith.addf %107, %106 : vector<88x128xf32>
    %c0_115 = arith.constant 0 : index
    %c0_116 = arith.constant 0 : index
    %109 = vector.load %arg9[%c0_115, %c0_116] : memref<88x128xf32, #tpu.memory_space<vmem>>, vector<88x128xf32>
    tpu.vector_store %arg9[%c0_115, %c0_116], %108 {strides = array<i32>} : memref<88x128xf32, #tpu.memory_space<vmem>>, vector<88x128xf32>,
    %c88_i32_117 = arith.constant 88 : i32
    %110 = arith.muli %1, %c88_i32_117 : i32
    %111 = tpu.assume_multiple %110, 8 : i32
    %c3_i32 = arith.constant 3 : i32
    %c3_i32_118 = arith.constant 3 : i32
    %c0_i32_119 = arith.constant 0 : i32
    %112 = tpu.memref_slice %arg5[%111, %c0_i32_119] : memref<192x4xbf16, #tpu.memory_space<any>> -> memref<104x4xbf16, #tpu.memory_space<any>>
    %c0_i32_120 = arith.constant 0 : i32
    %c0_i32_121 = arith.constant 0 : i32
    %113 = tpu.memref_slice %arg10[%11, %c3_i32, %c0_i32_120, %c0_i32_121] : memref<2x4x104x4xbf16, #tpu.memory_space<vmem>> -> memref<1x1x104x4xbf16, #tpu.memory_space<vmem>>
    %114 = tpu.memref_squeeze %113 : memref<1x1x104x4xbf16, #tpu.memory_space<vmem>> -> memref<104x4xbf16, #tpu.memory_space<vmem>>
    %115 = tpu.memref_slice %arg11[%11, %c3_i32_118] : memref<2x4x!tpu.dma_semaphore, #tpu.memory_space<semaphore_mem>> -> memref<1x1x!tpu.dma_semaphore, #tpu.memory_space<semaphore_mem>>
    %116 = tpu.memref_squeeze %115 : memref<1x1x!tpu.dma_semaphore, #tpu.memory_space<semaphore_mem>> -> memref<!tpu.dma_semaphore, #tpu.memory_space<semaphore_mem>>
    tpu.wait_dma2 semaphore(%116 : memref<!tpu.dma_semaphore, #tpu.memory_space<semaphore_mem>>) src(%112 : memref<104x4xbf16, #tpu.memory_space<any>>) dst(%114 : memref<104x4xbf16, #tpu.memory_space<vmem>>)
    %c3_i32_122 = arith.constant 3 : i32
    %c0_i32_123 = arith.constant 0 : i32
    %c0_i32_124 = arith.constant 0 : i32
    %117 = tpu.memref_slice %arg10[%11, %c3_i32_122, %c0_i32_123, %c0_i32_124] : memref<2x4x104x4xbf16, #tpu.memory_space<vmem>> -> memref<1x1x104x4xbf16, #tpu.memory_space<vmem>>
    %118 = tpu.memref_squeeze %117 : memref<1x1x104x4xbf16, #tpu.memory_space<vmem>> -> memref<104x4xbf16, #tpu.memory_space<vmem>>
    %c0_125 = arith.constant 0 : index
    %c0_126 = arith.constant 0 : index
    %119 = vector.load %118[%c0_125, %c0_126] : memref<104x4xbf16, #tpu.memory_space<vmem>>, vector<88x4xbf16>
    %c4 = arith.constant 4 : index
    %c0_127 = arith.constant 0 : index
    %c0_128 = arith.constant 0 : index
    %120 = vector.load %arg6[%c4, %c0_127, %c0_128] : memref<9x4x128xbf16, #tpu.memory_space<vmem>>, vector<1x4x128xbf16>
    %121 = vector.shape_cast %120 : vector<1x4x128xbf16> to vector<4x128xbf16>
    %cst_129 = arith.constant dense<0.000000e+00> : vector<88x128xf32>
    %122 = tpu.matmul %119, %121, %cst_129 {dimension_numbers = #tpu.dot_dimension_numbers<[1], [0], [0], [1], [0, 0, 1, 1], [], []>} : vector<88x4xbf16>, vector<4x128xbf16>, vector<88x128xf32> -> vector<88x128xf32>
    %c0_130 = arith.constant 0 : index
    %c0_131 = arith.constant 0 : index
    %123 = vector.load %arg9[%c0_130, %c0_131] : memref<88x128xf32, #tpu.memory_space<vmem>>, vector<88x128xf32>
    %124 = arith.addf %123, %122 : vector<88x128xf32>
    %c0_132 = arith.constant 0 : index
    %c0_133 = arith.constant 0 : index
    %125 = vector.load %arg9[%c0_132, %c0_133] : memref<88x128xf32, #tpu.memory_space<vmem>>, vector<88x128xf32>
    tpu.vector_store %arg9[%c0_132, %c0_133], %124 {strides = array<i32>} : memref<88x128xf32, #tpu.memory_space<vmem>>, vector<88x128xf32>,
    %c0_134 = arith.constant 0 : index
    %c0_135 = arith.constant 0 : index
    %126 = vector.load %arg9[%c0_134, %c0_135] : memref<88x128xf32, #tpu.memory_space<vmem>>, vector<88x128xf32>
    %c0_136 = arith.constant 0 : index
    %c0_137 = arith.constant 0 : index
    %127 = vector.load %arg7[%c0_136, %c0_137] : memref<1x128xf32, #tpu.memory_space<vmem>>, vector<1x128xf32>
    %128 = vector.broadcast %127 : vector<1x128xf32> to vector<88x128xf32>
    %129 = arith.addf %126, %128 : vector<88x128xf32>
    %c0_138 = arith.constant 0 : index
    %c0_139 = arith.constant 0 : index
    %130 = vector.load %arg8[%c0_138, %c0_139] : memref<88x128xf32, #tpu.memory_space<vmem>>, vector<88x128xf32>
    tpu.vector_store %arg8[%c0_138, %c0_139], %129 {strides = array<i32>} : memref<88x128xf32, #tpu.memory_space<vmem>>, vector<88x128xf32>,
    return
  }
  func.func @transform_4(%arg0: i32, %arg1: i32) -> (i32, i32, i32) {
    %c0_i32 = arith.constant 0 : i32
    %c0_i32_0 = arith.constant 0 : i32
    %c0_i32_1 = arith.constant 0 : i32
    %c0_i32_2 = arith.constant 0 : i32
    return %c0_i32, %c0_i32_0, %c0_i32_1 : i32, i32, i32
  }
  func.func @transform_5(%arg0: i32, %arg1: i32) -> (i32, i32) {
    %c0_i32 = arith.constant 0 : i32
    %c0_i32_0 = arith.constant 0 : i32
    %c0_i32_1 = arith.constant 0 : i32
    return %c0_i32, %c0_i32_0 : i32, i32
  }
  func.func @transform_6(%arg0: i32, %arg1: i32) -> (i32, i32) {
    %c1_i32 = arith.constant 1 : i32
    %0 = arith.muli %arg0, %c1_i32 : i32
    %1 = arith.addi %0, %arg1 : i32
    %c0_i32 = arith.constant 0 : i32
    %c0_i32_0 = arith.constant 0 : i32
    return %1, %c0_i32 : i32, i32
  }
}

</mosaic_0001>

<bundles_post_ra>
// kernel: _conv3x3_s2_p1.1
= control target key start
LH: loop header
LB: loop body
LE: loop exit
PB: predicated region body
PF: predicated region fallthrough
CT: control target
= control target key end

     0   :  { %s2842_s21 = smov 0   ;;  %s2844_s22 = smov 0   ;;  %s3141_s0 = inlined_call_operand.vmem [shape: bf16[192,4], index: 0, kind: input, shape index: {}]   ;;  %s3142_s1 = inlined_call_operand.vmem [shape: bf16[192,4], index: 1, kind: input, shape index: {}]   ;;  %s3143_s2 = inlined_call_operand.vmem [shape: bf16[192,4], index: 2, kind: input, shape index: {}]   ;;  %s3144_s3 = inlined_call_operand.vmem [shape: bf16[192,4], index: 3, kind: input, shape index: {}]   ;;  %s3145_s4 = inlined_call_operand.vmem [shape: bf16[9,4,128], index: 4, kind: input, shape index: {}]   ;;  %s3146_s5 = inlined_call_operand.vmem [shape: f32[1,128], index: 5, kind: input, shape index: {}]   ;;  %s3147_s6 = inlined_call_operand.vmem [shape: f32[176,128], index: 6, kind: output, shape index: {}]  }
   0x1   :  { %s2846_s23 = smov 0  }
   0x2 LB: > { %s28_s24 = sadd.s32 1, %s2800_s22  ;;  %p2288_p0 = scmp.ge.s32.totalorder %s2804_s23, 1  ;;  %s2804_s23 = sphi %s2846_s23, %s16_s23   ;;  %s2800_s22 = sphi %s2844_s22, %s3149_s22   ;;  %s2796_s21 = sphi %s2842_s21, %s3148_s21  }
   0x3   : > { %p30_p1 = scmp.ge.s32.totalorder %s28_s24, 2  ;;  %p120_p2 = scmp.lt.s32.totalorder %s2804_s23, 3 }
   0x5   : > { %s3151_s24 = smov (%p30_p1, %s28_s24), 0  ;;  %p121_p3 = pnand %p2288_p0, %p120_p2 }
   0x6   : > { %s139_s25 = smul.u32 (!%p121_p3), 11, %s2796_s21 }
   0x7   : > { %124 = sbr.rel (%p121_p3) target bundleno = 981 (0x3d5), region = 28 }
   0x8   : > { %s164_s26 = smul.u32 (!%p121_p3), 88, %s2796_s21  ;;  %p140_p4 = scmp.lt.s32.totalorder (!%p121_p3), %s139_s25, 21 }
   0xa   : > { %s165_s27 = sshra.s32 (!%p121_p3), %s164_s26, 3 }
   0xb   : > { %s2860_s28 = sshll.u32 (!%p121_p3), %s165_s27, 2 }
   0xc   : > { %s3153_s25 = smov (!%p140_p4, %s139_s25), 21  ;;  %s168_s8 = scalar_lea.vmem %s3141_s0, %s2860_s28 }
   0xd   : > { %s2289_s29 = sshll.u32 %s3153_s25, 3  ;;  %v186_v0 = vld [vmem:[%s168_s8] sm:$0xff]  ;;  %v188_v1 = vld [vmem:[%s168_s8 + $0x8] sm:$0xff]  ;;  %v190_v2 = vld [vmem:[%s168_s8 + $0x10] sm:$0xff] }
   0xe   : > { %s2869_s11 = scalar_lea.vmem %s3147_s6, %s2289_s29  ;;  %187 = vst [vmem:[#allocation3] sm:$0xff] %v186_v0  ;;  %v192_v3 = vld [vmem:[%s168_s8 + $0x18] sm:$0xff]  ;;  %v194_v4 = vld [vmem:[%s168_s8 + $0x20] sm:$0xff]  ;;  %v196_v5 = vld [vmem:[%s168_s8 + $0x28] sm:$0xff] }
   0xf   : > { %189 = vst [vmem:[#allocation3 + $0x8] sm:$0xff] %v188_v1  ;;  %v2291_v6 = vld [vmem:[%s168_s8 + $0x30] sm:$0xf] }
  0x10   : > { %191 = vst [vmem:[#allocation3 + $0x10] sm:$0xff] %v190_v2 }
  0x11   : > { %193 = vst [vmem:[#allocation3 + $0x18] sm:$0xff] %v192_v3 }
  0x12   : > { %195 = vst [vmem:[#allocation3 + $0x20] sm:$0xff] %v194_v4 }
  0x13   : > { %197 = vst [vmem:[#allocation3 + $0x28] sm:$0xff] %v196_v5 }
  0x14   : > { %2292 = vst [vmem:[#allocation3 + $0x30] sm:$0xf] %v2291_v6 }
  0x15   : > { %213 = vsyncadd [#allocation4], 832  ;;  %s215_s14 = scalar_lea.vmem %s3142_s1, %s2860_s28  ;;  %s2806_s15 = smov [#allocation4]  }
  0x16   : > { %s2876_s16 = scalar_lea.sflag %s2806_s15, 1  ;;  %v233_v7 = vld [vmem:[%s215_s14] sm:$0xff]  ;;  %v235_v8 = vld [vmem:[%s215_s14 + $0x8] sm:$0xff]  ;;  %v237_v9 = vld [vmem:[%s215_s14 + $0x10] sm:$0xff] }
  0x17   : > { %2294 = vst [vmem:[#allocation3 + $0x34] sm:$0xff] %v233_v7  ;;  %v239_v10 = vld [vmem:[%s215_s14 + $0x18] sm:$0xff]  ;;  %v241_v11 = vld [vmem:[%s215_s14 + $0x20] sm:$0xff]  ;;  %v243_v12 = vld [vmem:[%s215_s14 + $0x28] sm:$0xff] }
  0x18   : > { %2295 = vst [vmem:[#allocation3 + $0x3c] sm:$0xff] %v235_v8  ;;  %v2300_v13 = vld [vmem:[%s215_s14 + $0x30] sm:$0xf] }
  0x19   : > { %2296 = vst [vmem:[#allocation3 + $0x44] sm:$0xff] %v237_v9 }
  0x1a   : > { %2297 = vst [vmem:[#allocation3 + $0x4c] sm:$0xff] %v239_v10 }
  0x1b   : > { %2298 = vst [vmem:[#allocation3 + $0x54] sm:$0xff] %v241_v11 }
  0x1c   : > { %2299 = vst [vmem:[#allocation3 + $0x5c] sm:$0xff] %v243_v12 }
  0x1d   : > { %2301 = vst [vmem:[#allocation3 + $0x64] sm:$0xf] %v2300_v13 }
  0x1e   : > { %260 = vsyncadd %s2876_s16, 832  ;;  %s262_s19 = scalar_lea.vmem %s3143_s2, %s2860_s28  ;;  %s2884_s20 = scalar_lea.sflag %s2806_s15, 2 }
  0x1f   : > { %v280_v14 = vld [vmem:[%s262_s19] sm:$0xff]  ;;  %v282_v15 = vld [vmem:[%s262_s19 + $0x8] sm:$0xff]  ;;  %v284_v16 = vld [vmem:[%s262_s19 + $0x10] sm:$0xff] }
  0x20   : > { %2303 = vst [vmem:[#allocation3 + $0x68] sm:$0xff] %v280_v14  ;;  %v286_v17 = vld [vmem:[%s262_s19 + $0x18] sm:$0xff]  ;;  %v288_v18 = vld [vmem:[%s262_s19 + $0x20] sm:$0xff]  ;;  %v290_v19 = vld [vmem:[%s262_s19 + $0x28] sm:$0xff] }
  0x21   : > { %2304 = vst [vmem:[#allocation3 + $0x70] sm:$0xff] %v282_v15 }
  0x22   : > { %2305 = vst [vmem:[#allocation3 + $0x78] sm:$0xff] %v284_v16 }
  0x23   : > { %2306 = vst [vmem:[#allocation3 + $0x80] sm:$0xff] %v286_v17 }
  0x24   : > { %2307 = vst [vmem:[#allocation3 + $0x88] sm:$0xff] %v288_v18 }
  0x25   : > { %2308 = vst [vmem:[#allocation3 + $0x90] sm:$0xff] %v290_v19 }
  0x26   : > { %307 = vsyncadd %s2884_s20, 832  ;;  %s309_s26 = scalar_lea.vmem %s3144_s3, %s2860_s28  ;;  %s2892_s27 = scalar_lea.sflag %s2806_s15, 3 }
  0x27   : > { %v327_v20 = vld [vmem:[%s309_s26] sm:$0xff]  ;;  %v329_v21 = vld [vmem:[%s309_s26 + $0x8] sm:$0xff]  ;;  %v331_v22 = vld [vmem:[%s309_s26 + $0x10] sm:$0xff] }
  0x28   : > { %2312 = vst [vmem:[#allocation3 + $0x9c] sm:$0xff] %v327_v20  ;;  %v333_v23 = vld [vmem:[%s309_s26 + $0x18] sm:$0xff]  ;;  %v335_v24 = vld [vmem:[%s309_s26 + $0x20] sm:$0xff]  ;;  %v337_v25 = vld [vmem:[%s309_s26 + $0x28] sm:$0xff] }
  0x29   : > { %2313 = vst [vmem:[#allocation3 + $0xa4] sm:$0xff] %v329_v21 }
  0x2a   : > { %2314 = vst [vmem:[#allocation3 + $0xac] sm:$0xff] %v331_v22 }
  0x2b   : > { %2315 = vst [vmem:[#allocation3 + $0xb4] sm:$0xff] %v333_v23 }
  0x2c   : > { %2316 = vst [vmem:[#allocation3 + $0xbc] sm:$0xff] %v335_v24 }
  0x2d   : > { %2317 = vst [vmem:[#allocation3 + $0xc4] sm:$0xff] %v337_v25 }
  0x2e   : > { %354 = vsyncadd %s2892_s27, 832 }
  0x2f   : > { %2786 = dma.done.wait [#allocation4], 832 }
  0x30   : > { %2787 = vsyncadd [#allocation4], 4294966464  ;;  %vm622_vm0 = vcmask 1041408   ;;  %v574_v26 = vld [vmem:[%s3145_s4] sm:$0x3]  ;;  %v2696_v27 = vld [vmem:[#allocation3 + $0x8] sm:$0xff] }
  0x31   : > { %v624_v28 = vsel %vm622_vm0, %v574_v26, 0  ;;  %v2698_v29 = vld [vmem:[#allocation3 + $0x18] sm:$0xff]  ;;  %v2423_v30 = vld [vmem:[%s3145_s4 + $0xc] sm:$0x3]  ;;  %v2392_v31 = vld [vmem:[%s3145_s4 + $0x4] sm:$0x3] }
  0x32   : > { %2745 = vmatpush.bf16.msra.mxu1 %v624_v28  ;;  %2746 = vmatpush.bf16.msra.mxu2 %v624_v28  ;;  %vm603_vm1 = vcmask 31744   ;;  %v969_v32 = vsel %vm622_vm0, %v2423_v30, 0  ;;  %v786_v33 = vsel %vm622_vm0, %v2392_v31, 0  ;;  %v573_v34 = vld [vmem:[#allocation3 + $0x28] sm:$0xf]  ;;  %v2695_v38 = vld [vmem:[#allocation3] sm:$0xff] }
  0x33   : > { %2747 = vmatpush.bf16.msra.mxu3 %v624_v28  ;;  %v596_v35 = vunpack.c.l.b16 %v573_v34  ;;  %v2454_v36 = vld [vmem:[%s3145_s4 + $0x10] sm:$0x3]  ;;  %633 = vmatpush.bf16.msra.mxu0 %v624_v28  ;;  %v2457_v40 = vld [vmem:[#allocation3 + $0x4] sm:$0xe]  ;;  %v2712_v41 = vld [vmem:[#allocation3 + $0x4] sm:$0xf0] }
  0x34   : > { %v1117_v37 = vsel %vm622_vm0, %v2454_v36, 0  ;;  %v2713_v42 = vld [vmem:[#allocation3 + $0xc] sm:$0xff]  ;;  %v2458_v43 = vor.u32 %v2712_v41, %v2457_v40  ;;  %v2699_v47 = vld [vmem:[#allocation3 + $0x20] sm:$0xff]  ;;  %vm1086_vm2 = vcmask 1046528   ;;  %v2714_v61 = vld [vmem:[#allocation3 + $0x14] sm:$0xff] }
  0x35   : > { %2387 = vmatmul.msk.bf16.vlgmr.msra.gmra.mxu1 %vm603_vm1, %v2696_v27  ;;  %2389 = vmatmul.msk.bf16.vlgmr.msra.gmra.mxu2 %vm603_vm1, %v2698_v29  ;;  %v602_v39 = vpack.c.b16 %v596_v35, %v596_v35  ;;  %v1088_v45 = vrot.slane %v2713_v42, 1  ;;  %v2697_v46 = vld [vmem:[#allocation3 + $0x10] sm:$0xff]  ;;  %v2700_v48 = vld [vmem:[#allocation3] sm:$0xff]  ;;  %v2701_v51 = vld [vmem:[#allocation3 + $0x8] sm:$0xff]  ;;  %vm719_vm3 = vsmask.f32 7424 }
  0x36   : > { %978 = vmatpush.bf16.msrb.mxu2 %v969_v32  ;;  %795 = vmatpush.bf16.msrb.mxu1 %v786_v33  ;;  %v1087_v44 = vrot.slane %v2458_v43, 1  ;;  %v2706_v49 = vld [vmem:[#allocation3 + $0x4] sm:$0xff]  ;;  %v723_v52 = vshll.u32 %v2700_v48, 16  ;;  %v2707_v53 = vld [vmem:[#allocation3 + $0xc] sm:$0xff]  ;;  %v721_v55 = vshrl.u32 %v2700_v48, 16  ;;  %v728_v56 = vshll.u32 %v2701_v51, 16 }
  0x37   : > { %1126 = vmatpush.bf16.msrb.mxu3 %v1117_v37  ;;  %2386 = vmatmul.msk.bf16.vlgmr.msra.gmra.mxu0 %vm603_vm1, %v2695_v38  ;;  %v906_v54 = vshll.u32 %v2706_v49, 16  ;;  %v904_v58 = vshrl.u32 %v2706_v49, 16  ;;  %v911_v60 = vshll.u32 %v2707_v53, 16  ;;  %v1090_v2 = vrot.slane %v2714_v61, 1  ;;  %v2702_v6 = vld [vmem:[#allocation3 + $0x10] sm:$0xff]  ;;  %v2715_v12 = vld [vmem:[#allocation3 + $0x1c] sm:$0xff] }
  0x38   : > { %2391 = vmatmul.msk.bf16.vlgmr.msra.gmra.mxu3 %vm603_vm1, %v602_v39  ;;  %v1089_v50 = vsel %vm1086_vm2, %v1087_v44, %v1088_v45  ;;  %v725_v57 = vrot.slane %v723_v52, 1  ;;  %v730_v63 = vrot.slane %v728_v56, 1  ;;  %v2708_v7 = vld [vmem:[#allocation3 + $0x14] sm:$0xff]  ;;  %v732_v8 = vshrl.u32 %v2701_v51, 16  ;;  %v2709_v22 = vld [vmem:[#allocation3 + $0x1c] sm:$0xff]  ;;  %v2716_v27 = vld [vmem:[#allocation3 + $0x24] sm:$0xff] }
  0x39   : > { %v908_v59 = vrot.slane %v906_v54, 1  ;;  %v913_v1 = vrot.slane %v911_v60, 1  ;;  %v1091_v5 = vsel %vm1086_vm2, %v1088_v45, %v1090_v2  ;;  %v736_v9 = vshll.u32 %v2702_v6, 16  ;;  %v2703_v21 = vld [vmem:[#allocation3 + $0x18] sm:$0xff]  ;;  %v2704_v36 = vld [vmem:[#allocation3 + $0x20] sm:$0xff] }
  0x3a   : > { %v726_v62 = vor.u32 %v725_v57, %v721_v55  ;;  %v915_v10 = vshrl.u32 %v2707_v53, 16  ;;  %v919_v11 = vshll.u32 %v2708_v7, 16  ;;  %v734_v13 = vor.u32 %v732_v8, %v730_v63  ;;  %v2710_v37 = vld [vmem:[#allocation3 + $0x24] sm:$0xff]  ;;  %v2477_v38 = vld [vmem:[#allocation3 + $0x2c] sm:$0xf] }
  0x3b   : > { %v909_v0 = vor.u32 %v908_v59, %v904_v58  ;;  %v738_v14 = vrot.slane %v736_v9, 1  ;;  %v1092_v17 = vrot.slane %v2715_v12, 1  ;;  %v740_v23 = vshrl.u32 %v2702_v6, 16  ;;  %v2717_v39 = vld [vmem:[#allocation3 + $0x2c] sm:$0x10] }
  0x3c   : > { %v731_v3 = vsel %vm719_vm3, %v726_v62, %v730_v63  ;;  %v917_v15 = vor.u32 %v915_v10, %v913_v1  ;;  %v921_v16 = vrot.slane %v919_v11, 1  ;;  %v744_v24 = vshll.u32 %v2703_v21, 16  ;;  %v2415_v52 = vld [vmem:[#allocation3 + $0x28] sm:$0xf]  ;;  %v2705_v53 = vld [vmem:[#allocation3 + $0x28] sm:$0x10] }
  0x3d   : > { %v914_v4 = vsel %vm719_vm3, %v909_v0, %v913_v1  ;;  %v739_v18 = vsel %vm719_vm3, %v734_v13, %v738_v14  ;;  %v1093_v20 = vsel %vm1086_vm2, %v1090_v2, %v1092_v17  ;;  %v923_v25 = vshrl.u32 %v2708_v7, 16  ;;  %v2446_v54 = vld [vmem:[#allocation3 + $0x2c] sm:$0xf]  ;;  %v2711_v55 = vld [vmem:[#allocation3 + $0x2c] sm:$0x10] }
  0x3e   : > { %v922_v19 = vsel %vm719_vm3, %v917_v15, %v921_v16  ;;  %v927_v26 = vshll.u32 %v2709_v22, 16  ;;  %v742_v28 = vor.u32 %v740_v23, %v738_v14  ;;  %v746_v29 = vrot.slane %v744_v24, 1 }
  0x3f   : > { %v925_v30 = vor.u32 %v923_v25, %v921_v16  ;;  %v1094_v32 = vrot.slane %v2716_v27, 1  ;;  %v748_v40 = vshrl.u32 %v2703_v21, 16  ;;  %v752_v41 = vshll.u32 %v2704_v36, 16 }
  0x40   : > { %v929_v31 = vrot.slane %v927_v26, 1  ;;  %v747_v33 = vsel %vm719_vm3, %v742_v28, %v746_v29  ;;  %v931_v42 = vshrl.u32 %v2709_v22, 16  ;;  %v935_v43 = vshll.u32 %v2710_v37, 16 }
  0x41   : > { %v1095_v35 = vsel %vm1086_vm2, %v1092_v17, %v1094_v32  ;;  %v2478_v44 = vor.u32 %v2717_v39, %v2477_v38  ;;  %v750_v45 = vor.u32 %v748_v40, %v746_v29  ;;  %v2416_v57 = vor.u32 %v2705_v53, %v2415_v52 }
  0x42   : > { %v930_v34 = vsel %vm719_vm3, %v925_v30, %v929_v31  ;;  %v937_v48 = vrot.slane %v935_v43, 1  ;;  %v2447_v58 = vor.u32 %v2711_v55, %v2446_v54  ;;  %v756_v59 = vshrl.u32 %v2704_v36, 16 }
  0x43   : > { %v1096_v49 = vrot.slane %v2478_v44, 1  ;;  %v760_v60 = vshll.u32 %v2416_v57, 16  ;;  %v939_v61 = vshrl.u32 %v2710_v37, 16 }
  0x44   : > { %v943_v62 = vshll.u32 %v2447_v58, 16  ;;  %v947_v6 = vshrl.u32 %v2447_v58, 16 }
  0x45   : > { %2388 = vmatmul.msk.bf16.gmra.mxu1 %vm603_vm1, %v2697_v46  ;;  %2390 = vmatmul.msk.bf16.gmra.mxu2 %vm603_vm1, %v2699_v47  ;;  %v754_v46 = vrot.slane %v752_v41, 1  ;;  %v933_v47 = vor.u32 %v931_v42, %v929_v31  ;;  %v1097_v56 = vsel %vm1086_vm2, %v1094_v32, %v1096_v49  ;;  %v762_v0 = vrot.slane %v760_v60, 1 }
  0x46   : > { %v941_v1 = vor.u32 %v939_v61, %v937_v48  ;;  %v945_v2 = vrot.slane %v943_v62, 1 }
  0x47   : > { %v938_v51 = vsel %vm719_vm3, %v933_v47, %v937_v48  ;;  %v758_v63 = vor.u32 %v756_v59, %v754_v46 }
  0x48   : > { %2479 = vmatmul.msk.bf16.vlgmr.msrb.gmra.mxu3 %vm603_vm1, %v1089_v50  ;;  %v755_v50 = vsel %vm719_vm3, %v750_v45, %v754_v46  ;;  %v949_v8 = vor.u32 %v947_v6, %v945_v2 }
  0x55   : > { %2417 = vmatmul.msk.bf16.vlgmr.msrb.gmra.mxu1 %vm603_vm1, %v731_v3  ;;  %2448 = vmatmul.msk.bf16.vlgmr.msrb.gmra.mxu2 %vm603_vm1, %v914_v4  ;;  %v763_v3 = vsel %vm719_vm3, %v758_v63, %v762_v0  ;;  %v946_v4 = vsel %vm719_vm3, %v941_v1, %v945_v2 }
  0x58   : > { %2480 = vmatmul.msk.bf16.gmra.mxu3 %vm603_vm1, %v1091_v5  ;;  %v764_v5 = vshrl.u32 %v2416_v57, 16 }
  0x5a   : > { %v766_v7 = vor.u32 %v764_v5, %v762_v0 }
  0x65   : > { %2418 = vmatmul.msk.bf16.gmra.mxu1 %vm603_vm1, %v739_v18  ;;  %2449 = vmatmul.msk.bf16.gmra.mxu2 %vm603_vm1, %v922_v19 }
  0x68   : > { %2481 = vmatmul.msk.bf16.gmra.mxu3 %vm603_vm1, %v1093_v20 }
  0x75   : > { %2419 = vmatmul.msk.bf16.gmra.mxu1 %vm603_vm1, %v747_v33  ;;  %2450 = vmatmul.msk.bf16.gmra.mxu2 %vm603_vm1, %v930_v34 }
  0x78   : > { %2482 = vmatmul.msk.bf16.gmra.mxu3 %vm603_vm1, %v1095_v35 }
  0x85   : > { %2420 = vmatmul.msk.bf16.gmra.mxu1 %vm603_vm1, %v755_v50  ;;  %2451 = vmatmul.msk.bf16.gmra.mxu2 %vm603_vm1, %v938_v51 }
  0x88   : > { %2483 = vmatmul.msk.bf16.gmra.mxu3 %vm603_vm1, %v1097_v56 }
  0x95   : > { %2421 = vmatmul.msk.bf16.gmra.mxu1 %vm603_vm1, %v763_v3  ;;  %2452 = vmatmul.msk.bf16.gmra.mxu2 %vm603_vm1, %v946_v4 }
  0x98   : > { %2484 = vmatmul.msk.bf16.gmra.mxu3 %vm603_vm1, %v1096_v49 }
  0xa5   : > { %2422 = vmatmul.msk.bf16.gmra.mxu1 %vm603_vm1, %v766_v7  ;;  %2453 = vmatmul.msk.bf16.gmra.mxu2 %vm603_vm1, %v949_v8 }
  0xb2   : > { %v640_v9 = vpop.f32.mrf.mxu1 }
  0xb4   : > { %v635_v20 = vpop.f32.mrf.mxu0 }
  0xb8   : > { %v650_v10 = vpop.f32.mrf.mxu2 }
  0xba   : > { %v642_v11 = vpop.f32.mrf.mxu1 }
  0xbb   : > { %v2950_v12 = vpop.f32.mrf.mxu3 }
  0xbc   : > { %v637_v29 = vpop.f32.mrf.mxu0 }
  0xc0   : > { %v652_v13 = vpop.f32.mrf.mxu2 }
  0xc2   : > { %v645_v14 = vpop.f32.mrf.mxu1 }
  0xc3   : > { %v662_v15 = vpop.f32.mrf.mxu3 }
  0xc8   : > { %v655_v16 = vpop.f32.mrf.mxu2 }
  0xca   : > { %v647_v17 = vpop.f32.mrf.mxu1 }
  0xcb   : > { %v1128_v18 = vpop.f32.mrf.mxu3 }
  0xd0   : > { %v657_v19 = vpop.f32.mrf.mxu2 }
  0xd2   : > { %v797_v21 = vpop.f32.mrf.mxu1 }
  0xd3   : > { %v1130_v22 = vpop.f32.mrf.mxu3  ;;  %v837_v23 = vadd.f32 %v797_v21, %v635_v20 }
  0xd8   : > { %v980_v24 = vpop.f32.mrf.mxu2 }
  0xd9   : > { %v1020_v25 = vadd.f32 %v980_v24, %v837_v23 }
  0xda   : > { %v799_v26 = vpop.f32.mrf.mxu1 }
  0xdb   : > { %v1133_v27 = vpop.f32.mrf.mxu3  ;;  %v2952_v28 = vadd.f32 %v1128_v18, %v1020_v25  ;;  %v838_v30 = vadd.f32 %v799_v26, %v637_v29 }
  0xe0   : > { %v982_v31 = vpop.f32.mrf.mxu2 }
  0xe1   : > { %v1021_v32 = vadd.f32 %v982_v31, %v838_v30 }
  0xe2   : > { %v802_v33 = vpop.f32.mrf.mxu1 }
  0xe3   : > { %v1135_v34 = vpop.f32.mrf.mxu3  ;;  %v2954_v35 = vadd.f32 %v1130_v22, %v1021_v32  ;;  %v839_v36 = vadd.f32 %v802_v33, %v640_v9 }
  0xe8   : > { %v985_v37 = vpop.f32.mrf.mxu2 }
  0xe9   : > { %v1022_v38 = vadd.f32 %v985_v37, %v839_v36 }
  0xea   : > { %v804_v39 = vpop.f32.mrf.mxu1 }
  0xeb   : > { %v1138_v40 = vpop.f32.mrf.mxu3  ;;  %v2956_v41 = vadd.f32 %v1133_v27, %v1022_v38  ;;  %v840_v42 = vadd.f32 %v804_v39, %v642_v11 }
  0xf0   : > { %v987_v43 = vpop.f32.mrf.mxu2 }
  0xf1   : > { %v1023_v44 = vadd.f32 %v987_v43, %v840_v42 }
  0xf2   : > { %v807_v45 = vpop.f32.mrf.mxu1 }
  0xf3   : > { %v1140_v46 = vpop.f32.mrf.mxu3  ;;  %v2958_v47 = vadd.f32 %v1135_v34, %v1023_v44  ;;  %v841_v48 = vadd.f32 %v807_v45, %v645_v14 }
  0xf8   : > { %v990_v49 = vpop.f32.mrf.mxu2 }
  0xf9   : > { %v1024_v50 = vadd.f32 %v990_v49, %v841_v48 }
  0xfa   : > { %v809_v51 = vpop.f32.mrf.mxu1 }
  0xfb   : > { %v1143_v52 = vpop.f32.mrf.mxu3  ;;  %v2960_v53 = vadd.f32 %v1138_v40, %v1024_v50  ;;  %v842_v54 = vadd.f32 %v809_v51, %v647_v17 }
 0x100   : > { %v992_v55 = vpop.f32.mrf.mxu2 }
 0x101   : > { %v1025_v56 = vadd.f32 %v992_v55, %v842_v54 }
 0x102   : > { %v812_v57 = vpop.f32.mrf.mxu1 }
 0x103   : > { %v1145_v58 = vpop.f32.mrf.mxu3  ;;  %v2962_v59 = vadd.f32 %v1140_v46, %v1025_v56  ;;  %v843_v60 = vadd.f32 %v812_v57, %v650_v10 }
 0x108   : > { %v995_v61 = vpop.f32.mrf.mxu2 }
 0x109   : > { %v1026_v62 = vadd.f32 %v995_v61, %v843_v60 }
 0x10a   : > { %v814_v63 = vpop.f32.mrf.mxu1 }
 0x10b   : > { %v1148_v0 = vpop.f32.mrf.mxu3  ;;  %v2964_v1 = vadd.f32 %v1143_v52, %v1026_v62  ;;  %v844_v2 = vadd.f32 %v814_v63, %v652_v13 }
 0x110   : > { %v997_v3 = vpop.f32.mrf.mxu2 }
 0x111   : > { %v1027_v4 = vadd.f32 %v997_v3, %v844_v2 }
 0x112   : > { %v817_v5 = vpop.f32.mrf.mxu1 }
 0x113   : > { %v1150_v6 = vpop.f32.mrf.mxu3  ;;  %v2966_v7 = vadd.f32 %v1145_v58, %v1027_v4  ;;  %v845_v8 = vadd.f32 %v817_v5, %v655_v16 }
 0x118   : > { %v1000_v9 = vpop.f32.mrf.mxu2 }
 0x119   : > { %v1028_v11 = vadd.f32 %v1000_v9, %v845_v8 }
 0x11a   : > { %v819_v14 = vpop.f32.mrf.mxu1 }
 0x11b   : > { %v1153_v15 = vpop.f32.mrf.mxu3  ;;  %v2968_v10 = vadd.f32 %v1148_v0, %v1028_v11  ;;  %v846_v17 = vadd.f32 %v819_v14, %v657_v19 }
 0x120   : > { %v1002_v18 = vpop.f32.mrf.mxu2 }
 0x121   : > { %v1029_v20 = vadd.f32 %v1002_v18, %v846_v17 }
 0x122   : > { %v822_v21 = vpop.f32.mrf.mxu1 }
 0x123   : > { %v1155_v22 = vpop.f32.mrf.mxu3  ;;  %v2970_v13 = vadd.f32 %v1150_v6, %v1029_v20  ;;  %v847_v23 = vadd.f32 %v822_v21, %v2950_v12 }
 0x128   : > { %v1005_v24 = vpop.f32.mrf.mxu2 }
 0x129   : > { %v1030_v25 = vadd.f32 %v1005_v24, %v847_v23 }
 0x12a   : > { %v824_v26 = vpop.f32.mrf.mxu1 }
 0x12b   : > { %v2973_v16 = vadd.f32 %v1153_v15, %v1030_v25 }
 0x130   : > { %v1007_v27 = vpop.f32.mrf.mxu2 }
 0x131   : > { %2788 = dma.done.wait %s2876_s16, 832 }
 0x132   : > { %2789 = vsyncadd %s2876_s16, 4294966464  ;;  %v2496_v19 = vld [vmem:[%s3145_s4 + $0x2] sm:$0x3]  ;;  %v2535_v29 = vld [vmem:[%s3145_s4 + $0xe] sm:$0x3] }
 0x133   : > { %v1257_v30 = vsel %vm622_vm0, %v2496_v19, 0  ;;  %v2718_v12 = vld [vmem:[#allocation3 + $0x34] sm:$0xff]  ;;  %v1440_v31 = vsel %vm622_vm0, %v2535_v29, 0  ;;  %v2724_v33 = vld [vmem:[#allocation3 + $0x40] sm:$0xff]  ;;  %v2725_v43 = vld [vmem:[#allocation3 + $0x48] sm:$0xff] }
 0x134   : > { %v2723_v32 = vld [vmem:[#allocation3 + $0x38] sm:$0xff]  ;;  %1266 = vmatpush.bf16.msrb.mxu0 %v1257_v30  ;;  %1449 = vmatpush.bf16.msra.mxu1 %v1440_v31  ;;  %v1382_v37 = vshll.u32 %v2724_v33, 16  ;;  %v1386_v44 = vshrl.u32 %v2724_v33, 16  ;;  %v1390_v45 = vshll.u32 %v2725_v43, 16  ;;  %v2726_v51 = vld [vmem:[#allocation3 + $0x50] sm:$0xff]  ;;  %v1394_v52 = vshrl.u32 %v2725_v43, 16 }
 0x135   : > { %v1375_v34 = vshrl.u32 %v2723_v32, 16  ;;  %v1377_v36 = vshll.u32 %v2723_v32, 16  ;;  %v2719_v46 = vld [vmem:[#allocation3 + $0x3c] sm:$0xff]  ;;  %v1398_v54 = vshll.u32 %v2726_v51, 16  ;;  %v2720_v55 = vld [vmem:[#allocation3 + $0x44] sm:$0xff]  ;;  %v1402_v61 = vshrl.u32 %v2726_v51, 16 }
 0x136   : > { %v1384_v39 = vrot.slane %v1382_v37, 1  ;;  %v1392_v49 = vrot.slane %v1390_v45, 1  ;;  %v2727_v60 = vld [vmem:[#allocation3 + $0x58] sm:$0xff]  ;;  %v2721_v63 = vld [vmem:[#allocation3 + $0x4c] sm:$0xff]  ;;  %v2558_v4 = vld [vmem:[#allocation3 + $0x60] sm:$0xf] }
 0x137   : > { %2517 = vmatmul.msk.bf16.vlgmr.msrb.gmra.mxu0 %vm603_vm1, %v2718_v12  ;;  %v1379_v38 = vrot.slane %v1377_v36, 1  ;;  %v1400_v57 = vrot.slane %v1398_v54, 1  ;;  %v1406_v62 = vshll.u32 %v2727_v60, 16  ;;  %v2728_v5 = vld [vmem:[#allocation3 + $0x60] sm:$0x10]  ;;  %v1410_v8 = vshrl.u32 %v2727_v60, 16 }
 0x138   : > { %v1388_v48 = vor.u32 %v1386_v44, %v1384_v39  ;;  %v1396_v56 = vor.u32 %v1394_v52, %v1392_v49  ;;  %v2559_v6 = vor.u32 %v2728_v5, %v2558_v4  ;;  %v2722_v11 = vld [vmem:[#allocation3 + $0x54] sm:$0xff]  ;;  %v2495_v18 = vld [vmem:[#allocation3 + $0x5c] sm:$0xf] }
 0x139   : > { %v1380_v40 = vor.u32 %v1379_v38, %v1375_v34  ;;  %v1404_v0 = vor.u32 %v1402_v61, %v1400_v57  ;;  %v1408_v2 = vrot.slane %v1406_v62, 1  ;;  %v1231_v20 = vunpack.c.l.b16 %v2495_v18 }
 0x13a   : > { %v1393_v50 = vsel %vm719_vm3, %v1388_v48, %v1392_v49  ;;  %v1401_v58 = vsel %vm719_vm3, %v1396_v56, %v1400_v57  ;;  %v1414_v9 = vshll.u32 %v2559_v6, 16  ;;  %v1418_v22 = vshrl.u32 %v2559_v6, 16 }
 0x13b   : > { %v1385_v42 = vsel %vm719_vm3, %v1380_v40, %v1384_v39  ;;  %v1409_v3 = vsel %vm719_vm3, %v1404_v0, %v1408_v2  ;;  %v1412_v14 = vor.u32 %v1410_v8, %v1408_v2  ;;  %v1237_v21 = vpack.c.b16 %v1231_v20, %v1231_v20 }
 0x13c   : > { %2560 = vmatmul.msk.bf16.vlgmr.msra.gmra.mxu1 %vm603_vm1, %v1385_v42  ;;  %v1416_v15 = vrot.slane %v1414_v9, 1 }
 0x13e   : > { %v1417_v17 = vsel %vm719_vm3, %v1412_v14, %v1416_v15  ;;  %v1420_v23 = vor.u32 %v1418_v22, %v1416_v15 }
 0x147   : > { %2518 = vmatmul.msk.bf16.gmra.mxu0 %vm603_vm1, %v2719_v46 }
 0x14c   : > { %2561 = vmatmul.msk.bf16.gmra.mxu1 %vm603_vm1, %v1393_v50 }
 0x157   : > { %2519 = vmatmul.msk.bf16.gmra.mxu0 %vm603_vm1, %v2720_v55 }
 0x15c   : > { %2562 = vmatmul.msk.bf16.gmra.mxu1 %vm603_vm1, %v1401_v58 }
 0x167   : > { %2520 = vmatmul.msk.bf16.gmra.mxu0 %vm603_vm1, %v2721_v63 }
 0x16c   : > { %2563 = vmatmul.msk.bf16.gmra.mxu1 %vm603_vm1, %v1409_v3 }
 0x177   : > { %2521 = vmatmul.msk.bf16.gmra.mxu0 %vm603_vm1, %v2722_v11 }
 0x17c   : > { %2564 = vmatmul.msk.bf16.gmra.mxu1 %vm603_vm1, %v1417_v17 }
 0x187   : > { %2522 = vmatmul.msk.bf16.gmra.mxu0 %vm603_vm1, %v1237_v21 }
 0x18c   : > { %2565 = vmatmul.msk.bf16.gmra.mxu1 %vm603_vm1, %v1420_v23 }
 0x1b4   : > { %v1268_v24 = vpop.f32.mrf.mxu0 }
 0x1b5   : > { %v1308_v25 = vadd.f32 %v1268_v24, %v2952_v28 }
 0x1b9   : > { %v1451_v26 = vpop.f32.mrf.mxu1 }
 0x1ba   : > { %v3003_v27 = vadd.f32 %v1451_v26, %v1308_v25 }
 0x1bc   : > { %v1270_v19 = vpop.f32.mrf.mxu0 }
 0x1bd   : > { %v1309_v29 = vadd.f32 %v1270_v19, %v2954_v35 }
 0x1c1   : > { %v1453_v30 = vpop.f32.mrf.mxu1 }
 0x1c2   : > { %v3006_v12 = vadd.f32 %v1453_v30, %v1309_v29 }
 0x1c4   : > { %v1273_v31 = vpop.f32.mrf.mxu0 }
 0x1c5   : > { %v1310_v32 = vadd.f32 %v1273_v31, %v2956_v41 }
 0x1c9   : > { %v1456_v33 = vpop.f32.mrf.mxu1 }
 0x1ca   : > { %v3009_v34 = vadd.f32 %v1456_v33, %v1310_v32 }
 0x1cc   : > { %v1275_v36 = vpop.f32.mrf.mxu0 }
 0x1cd   : > { %v1311_v37 = vadd.f32 %v1275_v36, %v2958_v47 }
 0x1d1   : > { %v1458_v38 = vpop.f32.mrf.mxu1 }
 0x1d2   : > { %v3012_v28 = vadd.f32 %v1458_v38, %v1311_v37 }
 0x1d4   : > { %v1278_v39 = vpop.f32.mrf.mxu0 }
 0x1d5   : > { %v1312_v40 = vadd.f32 %v1278_v39, %v2960_v53 }
 0x1d9   : > { %v1461_v42 = vpop.f32.mrf.mxu1 }
 0x1da   : > { %v3015_v35 = vadd.f32 %v1461_v42, %v1312_v40 }
 0x1dc   : > { %v1280_v43 = vpop.f32.mrf.mxu0 }
 0x1dd   : > { %v1313_v44 = vadd.f32 %v1280_v43, %v2962_v59 }
 0x1e1   : > { %v1463_v45 = vpop.f32.mrf.mxu1 }
 0x1e2   : > { %v3018_v41 = vadd.f32 %v1463_v45, %v1313_v44 }
 0x1e4   : > { %v1283_v46 = vpop.f32.mrf.mxu0 }
 0x1e5   : > { %v1314_v48 = vadd.f32 %v1283_v46, %v2964_v1 }
 0x1e9   : > { %v1466_v49 = vpop.f32.mrf.mxu1 }
 0x1ea   : > { %v3021_v47 = vadd.f32 %v1466_v49, %v1314_v48 }
 0x1ec   : > { %v1285_v50 = vpop.f32.mrf.mxu0 }
 0x1ed   : > { %v1315_v51 = vadd.f32 %v1285_v50, %v2966_v7 }
 0x1f1   : > { %v1468_v52 = vpop.f32.mrf.mxu1 }
 0x1f2   : > { %v3024_v53 = vadd.f32 %v1468_v52, %v1315_v51 }
 0x1f4   : > { %v1288_v54 = vpop.f32.mrf.mxu0 }
 0x1f5   : > { %v1316_v55 = vadd.f32 %v1288_v54, %v2968_v10 }
 0x1f9   : > { %v1471_v59 = vpop.f32.mrf.mxu1 }
 0x1fa   : > { %v3027_v56 = vadd.f32 %v1471_v59, %v1316_v55 }
 0x1fc   : > { %v1290_v57 = vpop.f32.mrf.mxu0 }
 0x1fd   : > { %v1317_v58 = vadd.f32 %v1290_v57, %v2970_v13 }
 0x201   : > { %v1473_v1 = vpop.f32.mrf.mxu1 }
 0x202   : > { %v3030_v60 = vadd.f32 %v1473_v1, %v1317_v58 }
 0x204   : > { %v1293_v61 = vpop.f32.mrf.mxu0 }
 0x205   : > { %v1318_v62 = vadd.f32 %v1293_v61, %v2973_v16 }
 0x209   : > { %v1476_v7 = vpop.f32.mrf.mxu1 }
 0x20a   : > { %v3033_v63 = vadd.f32 %v1476_v7, %v1318_v62 }
 0x20c   : > { %v1295_v0 = vpop.f32.mrf.mxu0 }
 0x211   : > { %v1478_v2 = vpop.f32.mrf.mxu1 }
 0x212   : > { %2790 = dma.done.wait %s2884_s20, 832 }
 0x213   : > { %2791 = vsyncadd %s2884_s20, 4294966464  ;;  %v2577_v10 = vld [vmem:[%s3145_s4 + $0x6] sm:$0x3]  ;;  %v2616_v13 = vld [vmem:[%s3145_s4 + $0xa] sm:$0x3] }
 0x214   : > { %v1580_v3 = vsel %vm622_vm0, %v2577_v10, 0  ;;  %v2729_v4 = vld [vmem:[#allocation3 + $0x68] sm:$0xff]  ;;  %v1763_v16 = vsel %vm622_vm0, %v2616_v13, 0  ;;  %v2735_v6 = vld [vmem:[#allocation3 + $0x70] sm:$0xff]  ;;  %v2736_v20 = vld [vmem:[#allocation3 + $0x78] sm:$0xff] }
 0x215   : > { %v2734_v5 = vld [vmem:[#allocation3 + $0x68] sm:$0xff]  ;;  %1589 = vmatpush.bf16.msra.mxu2 %v1580_v3  ;;  %1772 = vmatpush.bf16.msra.mxu3 %v1763_v16  ;;  %v1705_v11 = vshll.u32 %v2735_v6, 16  ;;  %v1709_v21 = vshrl.u32 %v2735_v6, 16  ;;  %v1713_v22 = vshll.u32 %v2736_v20, 16  ;;  %v2730_v23 = vld [vmem:[#allocation3 + $0x70] sm:$0xff]  ;;  %v2737_v19 = vld [vmem:[#allocation3 + $0x80] sm:$0xff] }
 0x216   : > { %v1698_v8 = vshrl.u32 %v2734_v5, 16  ;;  %v1700_v9 = vshll.u32 %v2734_v5, 16  ;;  %v1717_v29 = vshrl.u32 %v2736_v20, 16  ;;  %v1721_v30 = vshll.u32 %v2737_v19, 16  ;;  %v2731_v31 = vld [vmem:[#allocation3 + $0x78] sm:$0xff]  ;;  %v2738_v37 = vld [vmem:[#allocation3 + $0x88] sm:$0xff] }
 0x217   : > { %v1707_v15 = vrot.slane %v1705_v11, 1  ;;  %v1715_v25 = vrot.slane %v1713_v22, 1  ;;  %v1725_v38 = vshrl.u32 %v2737_v19, 16  ;;  %v1729_v39 = vshll.u32 %v2738_v37, 16  ;;  %v2732_v40 = vld [vmem:[#allocation3 + $0x80] sm:$0xff]  ;;  %v2733_v51 = vld [vmem:[#allocation3 + $0x88] sm:$0xff] }
 0x218   : > { %2598 = vmatmul.msk.bf16.vlgmr.msra.gmra.mxu2 %vm603_vm1, %v2729_v4  ;;  %v1702_v14 = vrot.slane %v1700_v9, 1  ;;  %v1723_v33 = vrot.slane %v1721_v30, 1  ;;  %v2639_v45 = vld [vmem:[#allocation3 + $0x90] sm:$0xf]  ;;  %v2739_v46 = vld [vmem:[#allocation3 + $0x90] sm:$0x10] }
 0x219   : > { %v1711_v24 = vor.u32 %v1709_v21, %v1707_v15  ;;  %v1719_v32 = vor.u32 %v1717_v29, %v1715_v25  ;;  %v1731_v43 = vrot.slane %v1729_v39, 1  ;;  %v2640_v48 = vor.u32 %v2739_v46, %v2639_v45  ;;  %v2576_v59 = vld [vmem:[#allocation3 + $0x90] sm:$0xf] }
 0x21a   : > { %v1703_v17 = vor.u32 %v1702_v14, %v1698_v8  ;;  %v1727_v42 = vor.u32 %v1725_v38, %v1723_v33  ;;  %v1733_v49 = vshrl.u32 %v2738_v37, 16  ;;  %v1554_v57 = vunpack.c.l.b16 %v2576_v59 }
 0x21b   : > { %v1716_v26 = vsel %vm719_vm3, %v1711_v24, %v1715_v25  ;;  %v1724_v36 = vsel %vm719_vm3, %v1719_v32, %v1723_v33  ;;  %v1737_v50 = vshll.u32 %v2640_v48, 16  ;;  %v1741_v1 = vshrl.u32 %v2640_v48, 16 }
 0x21c   : > { %v1708_v18 = vsel %vm719_vm3, %v1703_v17, %v1707_v15  ;;  %v1732_v44 = vsel %vm719_vm3, %v1727_v42, %v1731_v43  ;;  %v1735_v52 = vor.u32 %v1733_v49, %v1731_v43  ;;  %v1560_v58 = vpack.c.b16 %v1554_v57, %v1554_v57 }
 0x21d   : > { %2641 = vmatmul.msk.bf16.vlgmr.msra.gmra.mxu3 %vm603_vm1, %v1708_v18  ;;  %v1739_v54 = vrot.slane %v1737_v50, 1 }
 0x21f   : > { %v1740_v55 = vsel %vm719_vm3, %v1735_v52, %v1739_v54  ;;  %v1743_v61 = vor.u32 %v1741_v1, %v1739_v54 }
 0x228   : > { %2599 = vmatmul.msk.bf16.gmra.mxu2 %vm603_vm1, %v2730_v23 }
 0x22d   : > { %2642 = vmatmul.msk.bf16.gmra.mxu3 %vm603_vm1, %v1716_v26 }
 0x238   : > { %2600 = vmatmul.msk.bf16.gmra.mxu2 %vm603_vm1, %v2731_v31 }
 0x23d   : > { %2643 = vmatmul.msk.bf16.gmra.mxu3 %vm603_vm1, %v1724_v36 }
 0x248   : > { %2601 = vmatmul.msk.bf16.gmra.mxu2 %vm603_vm1, %v2732_v40 }
 0x24d   : > { %2644 = vmatmul.msk.bf16.gmra.mxu3 %vm603_vm1, %v1732_v44 }
 0x258   : > { %2602 = vmatmul.msk.bf16.gmra.mxu2 %vm603_vm1, %v2733_v51 }
 0x25d   : > { %2645 = vmatmul.msk.bf16.gmra.mxu3 %vm603_vm1, %v1740_v55 }
 0x268   : > { %2603 = vmatmul.msk.bf16.gmra.mxu2 %vm603_vm1, %v1560_v58 }
 0x26d   : > { %2646 = vmatmul.msk.bf16.gmra.mxu3 %vm603_vm1, %v1743_v61 }
 0x29b   : > { %v1591_v62 = vpop.f32.mrf.mxu2 }
 0x29c   : > { %v1631_v7 = vadd.f32 %v1591_v62, %v3003_v27 }
 0x2a0   : > { %v1774_v0 = vpop.f32.mrf.mxu3 }
 0x2a1   : > { %v3063_v2 = vadd.f32 %v1774_v0, %v1631_v7 }
 0x2a3   : > { %v1593_v10 = vpop.f32.mrf.mxu2 }
 0x2a4   : > { %v1632_v13 = vadd.f32 %v1593_v10, %v3006_v12 }
 0x2a8   : > { %v1776_v3 = vpop.f32.mrf.mxu3 }
 0x2a9   : > { %v3066_v4 = vadd.f32 %v1776_v3, %v1632_v13 }
 0x2ab   : > { %v1596_v16 = vpop.f32.mrf.mxu2 }
 0x2ac   : > { %v1633_v5 = vadd.f32 %v1596_v16, %v3009_v34 }
 0x2b0   : > { %v1779_v6 = vpop.f32.mrf.mxu3 }
 0x2b1   : > { %v3069_v8 = vadd.f32 %v1779_v6, %v1633_v5 }
 0x2b3   : > { %v1598_v9 = vpop.f32.mrf.mxu2 }
 0x2b4   : > { %v1634_v11 = vadd.f32 %v1598_v9, %v3012_v28 }
 0x2b8   : > { %v1781_v14 = vpop.f32.mrf.mxu3 }
 0x2b9   : > { %v3072_v27 = vadd.f32 %v1781_v14, %v1634_v11 }
 0x2bb   : > { %v1601_v15 = vpop.f32.mrf.mxu2 }
 0x2bc   : > { %v1635_v17 = vadd.f32 %v1601_v15, %v3015_v35 }
 0x2c0   : > { %v1784_v18 = vpop.f32.mrf.mxu3 }
 0x2c1   : > { %v3075_v12 = vadd.f32 %v1784_v18, %v1635_v17 }
 0x2c3   : > { %v1603_v20 = vpop.f32.mrf.mxu2 }
 0x2c4   : > { %v1636_v21 = vadd.f32 %v1603_v20, %v3018_v41 }
 0x2c8   : > { %v1786_v22 = vpop.f32.mrf.mxu3 }
 0x2c9   : > { %v3078_v34 = vadd.f32 %v1786_v22, %v1636_v21 }
 0x2cb   : > { %v1606_v23 = vpop.f32.mrf.mxu2 }
 0x2cc   : > { %v1637_v24 = vadd.f32 %v1606_v23, %v3021_v47 }
 0x2d0   : > { %v1789_v25 = vpop.f32.mrf.mxu3 }
 0x2d1   : > { %v3081_v28 = vadd.f32 %v1789_v25, %v1637_v24 }
 0x2d3   : > { %v1608_v26 = vpop.f32.mrf.mxu2 }
 0x2d4   : > { %v1638_v19 = vadd.f32 %v1608_v26, %v3024_v53 }
 0x2d8   : > { %v1791_v29 = vpop.f32.mrf.mxu3 }
 0x2d9   : > { %v3084_v35 = vadd.f32 %v1791_v29, %v1638_v19 }
 0x2db   : > { %v1611_v30 = vpop.f32.mrf.mxu2 }
 0x2dc   : > { %v1639_v31 = vadd.f32 %v1611_v30, %v3027_v56 }
 0x2e0   : > { %v1794_v41 = vpop.f32.mrf.mxu3 }
 0x2e1   : > { %v3087_v32 = vadd.f32 %v1794_v41, %v1639_v31 }
 0x2e3   : > { %v1613_v33 = vpop.f32.mrf.mxu2 }
 0x2e4   : > { %v1640_v36 = vadd.f32 %v1613_v33, %v3030_v60 }
 0x2e8   : > { %v1796_v47 = vpop.f32.mrf.mxu3 }
 0x2e9   : > { %v3090_v37 = vadd.f32 %v1796_v47, %v1640_v36 }
 0x2eb   : > { %v1616_v38 = vpop.f32.mrf.mxu2 }
 0x2ec   : > { %v1641_v39 = vadd.f32 %v1616_v38, %v3033_v63 }
 0x2f0   : > { %v1799_v53 = vpop.f32.mrf.mxu3 }
 0x2f1   : > { %v3093_v40 = vadd.f32 %v1799_v53, %v1641_v39 }
 0x2f3   : > { %v1618_v42 = vpop.f32.mrf.mxu2 }
 0x2f8   : > { %v1801_v43 = vpop.f32.mrf.mxu3 }
 0x2f9   : > { %2792 = dma.done.wait %s2892_s27, 832 }
 0x2fa   : > { %2793 = vsyncadd %s2892_s27, 4294966464  ;;  %v2658_v56 = vld [vmem:[%s3145_s4 + $0x8] sm:$0x3]  ;;  %v2740_v44 = vld [vmem:[#allocation3 + $0x9c] sm:$0xff] }
 0x2fb   : > { %v1903_v60 = vsel %vm622_vm0, %v2658_v56, 0  ;;  %v2741_v45 = vld [vmem:[#allocation3 + $0xa4] sm:$0xff]  ;;  %v2742_v63 = vld [vmem:[#allocation3 + $0xac] sm:$0xff]  ;;  %v2743_v46 = vld [vmem:[#allocation3 + $0xb4] sm:$0xff] }
 0x2fc   : > { %1912 = vmatpush.bf16.msra.mxu0 %v1903_v60  ;;  %v2744_v48 = vld [vmem:[#allocation3 + $0xbc] sm:$0xff]  ;;  %v2657_v49 = vld [vmem:[#allocation3 + $0xc4] sm:$0xf] }
 0x2fd   : > { %v1877_v50 = vunpack.c.l.b16 %v2657_v49  ;;  %v2773_v52 = vld [vmem:[%s3146_s5] ss:$0 sm:$0xff] }
 0x2ff   : > { %2679 = vmatmul.msk.bf16.vlgmr.msra.gmra.mxu0 %vm603_vm1, %v2740_v44  ;;  %v1883_v51 = vpack.c.b16 %v1877_v50, %v1877_v50 }
 0x30f   : > { %2680 = vmatmul.msk.bf16.gmra.mxu0 %vm603_vm1, %v2741_v45 }
 0x31f   : > { %2681 = vmatmul.msk.bf16.gmra.mxu0 %vm603_vm1, %v2742_v63 }
 0x32f   : > { %2682 = vmatmul.msk.bf16.gmra.mxu0 %vm603_vm1, %v2743_v46 }
 0x33f   : > { %2683 = vmatmul.msk.bf16.gmra.mxu0 %vm603_vm1, %v2744_v48 }
 0x34f   : > { %2684 = vmatmul.msk.bf16.gmra.mxu0 %vm603_vm1, %v1883_v51 }
 0x37c   : > { %v1914_v54 = vpop.f32.mrf.mxu0 }
 0x37d   : > { %v1954_v55 = vadd.f32 %v1914_v54, %v3063_v2 }
 0x37f   : > { %v1991_v59 = vadd.f32 %v2773_v52, %v1954_v55 }
 0x381   : > { %2002 = vst [vmem:[%s2869_s11] sm:$0xff] %v1991_v59 }
 0x384   : > { %v1916_v57 = vpop.f32.mrf.mxu0 }
 0x385   : > { %v1955_v58 = vadd.f32 %v1916_v57, %v3066_v4 }
 0x387   : > { %v1992_v1 = vadd.f32 %v2773_v52, %v1955_v58 }
 0x389   : > { %2003 = vst [vmem:[%s2869_s11 + $0x8] sm:$0xff] %v1992_v1 }
 0x38c   : > { %v1919_v61 = vpop.f32.mrf.mxu0 }
 0x38d   : > { %v1956_v62 = vadd.f32 %v1919_v61, %v3069_v8 }
 0x38f   : > { %v1993_v7 = vadd.f32 %v2773_v52, %v1956_v62 }
 0x391   : > { %2004 = vst [vmem:[%s2869_s11 + $0x10] sm:$0xff] %v1993_v7 }
 0x394   : > { %v1921_v0 = vpop.f32.mrf.mxu0 }
 0x395   : > { %v1957_v10 = vadd.f32 %v1921_v0, %v3072_v27 }
 0x397   : > { %v1994_v13 = vadd.f32 %v2773_v52, %v1957_v10 }
 0x399   : > { %2005 = vst [vmem:[%s2869_s11 + $0x18] sm:$0xff] %v1994_v13 }
 0x39c   : > { %v1924_v2 = vpop.f32.mrf.mxu0 }
 0x39d   : > { %v1958_v3 = vadd.f32 %v1924_v2, %v3075_v12 }
 0x39f   : > { %v1995_v16 = vadd.f32 %v2773_v52, %v1958_v3 }
 0x3a1   : > { %2006 = vst [vmem:[%s2869_s11 + $0x20] sm:$0xff] %v1995_v16 }
 0x3a4   : > { %v1926_v4 = vpop.f32.mrf.mxu0 }
 0x3a5   : > { %v1959_v5 = vadd.f32 %v1926_v4, %v3078_v34 }
 0x3a7   : > { %v1996_v6 = vadd.f32 %v2773_v52, %v1959_v5 }
 0x3a9   : > { %2007 = vst [vmem:[%s2869_s11 + $0x28] sm:$0xff] %v1996_v6 }
 0x3ac   : > { %v1929_v8 = vpop.f32.mrf.mxu0 }
 0x3ad   : > { %v1960_v9 = vadd.f32 %v1929_v8, %v3081_v28 }
 0x3af   : > { %v1997_v11 = vadd.f32 %v2773_v52, %v1960_v9 }
 0x3b1   : > { %2008 = vst [vmem:[%s2869_s11 + $0x30] sm:$0xff] %v1997_v11 }
 0x3b4   : > { %v1931_v14 = vpop.f32.mrf.mxu0 }
 0x3b5   : > { %v1961_v27 = vadd.f32 %v1931_v14, %v3084_v35 }
 0x3b7   : > { %v1998_v15 = vadd.f32 %v2773_v52, %v1961_v27 }
 0x3b9   : > { %2009 = vst [vmem:[%s2869_s11 + $0x38] sm:$0xff] %v1998_v15 }
 0x3bc   : > { %v1934_v17 = vpop.f32.mrf.mxu0 }
 0x3bd   : > { %v1962_v18 = vadd.f32 %v1934_v17, %v3087_v32 }
 0x3bf   : > { %v1999_v12 = vadd.f32 %v2773_v52, %v1962_v18 }
 0x3c1   : > { %2010 = vst [vmem:[%s2869_s11 + $0x40] sm:$0xff] %v1999_v12 }
 0x3c4   : > { %v1936_v20 = vpop.f32.mrf.mxu0 }
 0x3c5   : > { %v1963_v21 = vadd.f32 %v1936_v20, %v3090_v37 }
 0x3c7   : > { %v2000_v22 = vadd.f32 %v2773_v52, %v1963_v21 }
 0x3c9   : > { %2011 = vst [vmem:[%s2869_s11 + $0x48] sm:$0xff] %v2000_v22 }
 0x3cc   : > { %v1939_v34 = vpop.f32.mrf.mxu0 }
 0x3cd   : > { %v1964_v23 = vadd.f32 %v1939_v34, %v3093_v40 }
 0x3cf   : > { %v2001_v24 = vadd.f32 %v2773_v52, %v1964_v23 }
 0x3d1   : > { %2012 = vst [vmem:[%s2869_s11 + $0x50] sm:$0xff] %v2001_v24 }
 0x3d4   : > { %v1941_v25 = vpop.f32.mrf.mxu0 }
 0x3d5 PF: > { %s16_s23 = sadd.s32 1, %s2804_s23   ;;  %s3148_s21 = smov %s2800_s22 }
 0x3d6   : > { %p13_p5 = scmp.ge.s32.totalorder %s16_s23, 4   ;;  %s3149_s22 = smov %s3151_s24 }
 0x3d8   :  { %15 = sbr.rel (!%p13_p5) target bundleno = 2 (0x2), region = 366 }
 0x3dd   :  { %2038 = vsyncmov [#allocation4] }
 0x3e0   :  { %s2039_s28 = vpop.sfrf %2038 }
 0x3e1   :  { %p2687_p6 = scmp.ne.s32.totalorder %s2039_s28, 0 }
 0x3e3   :  { %2043 = shalt.err (%p2687_p6)  }
 0x3e4   :  { %2045 = vsyncmov [#allocation4 + $0x1] }
 0x3e7   :  { %s2046_s11 = vpop.sfrf %2045 }
 0x3e8   :  { %p2688_p7 = scmp.ne.s32.totalorder %s2046_s11, 0 }
 0x3ea   :  { %2050 = shalt.err (%p2688_p7)  }
 0x3eb   :  { %2052 = vsyncmov [#allocation4 + $0x2] }
 0x3ee   :  { %s2053_s29 = vpop.sfrf %2052 }
 0x3ef   :  { %p2689_p8 = scmp.ne.s32.totalorder %s2053_s29, 0 }
 0x3f1   :  { %2057 = shalt.err (%p2689_p8)  }
 0x3f2   :  { %2059 = vsyncmov [#allocation4 + $0x3] }
 0x3f5   :  { %s2060_s30 = vpop.sfrf %2059 }
 0x3f6   :  { %p2690_p9 = scmp.ne.s32.totalorder %s2060_s30, 0 }
 0x3f8   :  { %2064 = shalt.err (%p2690_p9)  }
 0x3f9   :  { %2066 = vsyncmov [#allocation4 + $0x4] }
 0x3fc   :  { %s2067_s24 = vpop.sfrf %2066 }
 0x3fd   :  { %p2691_p10 = scmp.ne.s32.totalorder %s2067_s24, 0 }
 0x3ff   :  { %2071 = shalt.err (%p2691_p10)  }
 0x400   :  { %2073 = vsyncmov [#allocation4 + $0x5] }
 0x403   :  { %s2074_s0 = vpop.sfrf %2073 }
 0x404   :  { %p2692_p11 = scmp.ne.s32.totalorder %s2074_s0, 0 }
 0x406   :  { %2078 = shalt.err (%p2692_p11)  }
 0x407   :  { %2080 = vsyncmov [#allocation4 + $0x6] }
 0x40a   :  { %s2081_s1 = vpop.sfrf %2080 }
 0x40b   :  { %p2693_p12 = scmp.ne.s32.totalorder %s2081_s1, 0 }
 0x40d   :  { %2085 = shalt.err (%p2693_p12)  }
 0x40e   :  { %2087 = vsyncmov [#allocation4 + $0x7] }
 0x411   :  { %s2088_s2 = vpop.sfrf %2087 }
 0x412   :  { %p2694_p13 = scmp.ne.s32.totalorder %s2088_s2, 0 }
 0x414   :  { %2092 = shalt.err (%p2694_p13)  }

</bundles_post_ra>
